<compile_context>
chip_gen: v6e
topology: v6e:2x2x1
jax: 0.10.0
libtpu: 0.0.40
codegen_flags: <defaults>
</compile_context>

<pallas_src>
import math
import functools

import jax
import jax.numpy as jnp
from jax.experimental import pallas as pl
from jax.experimental.pallas import tpu as pltpu

# ---- model hyper-parameters ------------------------------------------------
DT = 0.001
TAU_MEM = 0.01
TAU_SYN = 0.002
ALPHA_MEM = math.exp(-DT / TAU_MEM)   # membrane decay
ALPHA_SYN = math.exp(-DT / TAU_SYN)   # synaptic decay
THRESH = 1.0

INPUT_DIM = 16
HIDDEN_DIM = 32        # same for both hidden layers
OUTPUT_DIM = 8
T_STEPS = 8
BATCH = 2

# hardware-tile padding targets (vreg = 8 sublanes x 128 lanes)
SUBLANE = 8
LANE = 128


def _round_up(v, m):
    return ((v + m - 1) // m) * m


# ---- Pallas kernel ----------------------------------------------------------
def rsnn_kernel(x_ref, w_in_ref, b_in_ref, w_rec_ref, w_12_ref, w_out_ref,
                y_ref, xp_ref, *, t_steps, n_pad):
    """Whole-sequence RSNN forward in one kernel invocation.

    x_ref:  (T*Np, Dp)  padded input, flattened time-major
    y_ref:  (T*Np, Op)  padded readout membrane per step (lane-dense stores)
    xp_ref: (T*Np, Hp)  VMEM scratch for the hoisted input projection
    Weights/bias are zero-padded to (Dp,Hp)/(1,Hp)/(Hp,Hp)/(Hp,Hp)/(Hp,Op).
    """
    a_m = jnp.float32(ALPHA_MEM)
    a_s = jnp.float32(ALPHA_SYN)

    # ---- hoisted input projection: one MXU call for all time steps ----------
    xp_ref[...] = (
        jnp.dot(x_ref[...], w_in_ref[...], preferred_element_type=jnp.float32)
        + b_in_ref[...]
    )

    hp = w_rec_ref.shape[1]
    op = w_out_ref.shape[1]

    # ---- state (one vreg each at padded sizes), carried through the loop ----
    syn1 = jnp.zeros((n_pad, hp), jnp.float32)
    mem1 = jnp.zeros((n_pad, hp), jnp.float32)
    out1 = jnp.zeros((n_pad, hp), jnp.float32)   # previous-step spikes (recurrent)
    syn2 = jnp.zeros((n_pad, hp), jnp.float32)
    mem2 = jnp.zeros((n_pad, hp), jnp.float32)
    syn_r = jnp.zeros((n_pad, op), jnp.float32)
    mem_r = jnp.zeros((n_pad, op), jnp.float32)

    # Fully-unrolled recurrence (T is small & static); all slices are static
    # and (8,128)-aligned.
    for t in range(t_steps):
        row = t * n_pad

        # ---- layer 1: recurrent LIF (first connection has bias, hoisted) ----
        i1 = xp_ref[row:row + n_pad, :] + jnp.dot(
            out1, w_rec_ref[...], preferred_element_type=jnp.float32)
        syn1 = a_s * syn1 + i1
        m1 = a_m * mem1 + (1.0 - a_m) * syn1
        s1 = jnp.where(m1 > THRESH, 1.0, 0.0).astype(jnp.float32)
        mem1 = m1 * (1.0 - s1)
        out1 = s1

        # ---- layer 2: feedforward LIF (no bias) ----
        i2 = jnp.dot(s1, w_12_ref[...], preferred_element_type=jnp.float32)
        syn2 = a_s * syn2 + i2
        m2 = a_m * mem2 + (1.0 - a_m) * syn2
        s2 = jnp.where(m2 > THRESH, 1.0, 0.0).astype(jnp.float32)
        mem2 = m2 * (1.0 - s2)

        # ---- readout group: leaky integrator, no spike/reset; out == mem ----
        ir = jnp.dot(s2, w_out_ref[...], preferred_element_type=jnp.float32)
        syn_r = a_s * syn_r + ir
        mem_r = a_m * mem_r + (1.0 - a_m) * syn_r

        # x_outs[t] = x_out[:, -1]  (unmasked (8,128) store)
        y_ref[row:row + n_pad, :] = mem_r


def base_rsnn_forward(x, w_in, b_in, w_rec, w_12, w_out):
    """x: (T, N, D_in) float32  ->  (T, N, OUTPUT_DIM) float32."""
    T, N, D = x.shape
    H1 = w_in.shape[1]
    H2 = w_12.shape[1]
    O = w_out.shape[1]
    assert H1 == H2, "this synthetic instantiation uses equal hidden dims"

    # ---- host-side zero padding to hardware tiles ---------------------------
    Np = _round_up(N, SUBLANE)
    Dp = _round_up(D, LANE)
    Hp = _round_up(H1, LANE)
    Op = _round_up(O, LANE)

    x_p = jnp.pad(x, ((0, 0), (0, Np - N), (0, Dp - D))).reshape(T * Np, Dp)
    w_in_p = jnp.pad(w_in, ((0, Dp - D), (0, Hp - H1)))
    b_in_p = jnp.pad(b_in, ((0, 0), (0, Hp - H1)))
    w_rec_p = jnp.pad(w_rec, ((0, Hp - H1), (0, Hp - H1)))
    w_12_p = jnp.pad(w_12, ((0, Hp - H1), (0, Hp - H2)))
    w_out_p = jnp.pad(w_out, ((0, Hp - H2), (0, Op - O)))

    kernel = functools.partial(rsnn_kernel, t_steps=T, n_pad=Np)

    grid_spec = pltpu.PrefetchScalarGridSpec(
        num_scalar_prefetch=0,
        grid=(1,),   # single invocation; whole sequence resident in VMEM
        in_specs=[
            pl.BlockSpec((T * Np, Dp), lambda i: (0, 0)),
            pl.BlockSpec((Dp, Hp), lambda i: (0, 0)),
            pl.BlockSpec((1, Hp), lambda i: (0, 0)),
            pl.BlockSpec((Hp, Hp), lambda i: (0, 0)),
            pl.BlockSpec((Hp, Hp), lambda i: (0, 0)),
            pl.BlockSpec((Hp, Op), lambda i: (0, 0)),
        ],
        out_specs=pl.BlockSpec((T * Np, Op), lambda i: (0, 0)),
        scratch_shapes=[
            pltpu.VMEM((T * Np, Hp), jnp.float32),   # hoisted input projection
        ],
    )

    y_p = pl.pallas_call(
        kernel,
        out_shape=jax.ShapeDtypeStruct((T * Np, Op), jnp.float32),
        grid_spec=grid_spec,
        compiler_params=pltpu.CompilerParams(
            dimension_semantics=("arbitrary",),
        ),
    )(x_p, w_in_p, b_in_p, w_rec_p, w_12_p, w_out_p)

    # strip padding back to the PyTorch output shape (T, N, output_dim)
    return y_p.reshape(T, Np, Op)[:, :N, :O]


# ---- pure-JAX reference (same math, for a correctness check) ---------------
def reference_forward(x, w_in, b_in, w_rec, w_12, w_out):
    T, N, _ = x.shape
    H1, H2, O = w_in.shape[1], w_12.shape[1], w_out.shape[1]
    z = lambda h: jnp.zeros((N, h), jnp.float32)
    syn1, mem1, out1 = z(H1), z(H1), z(H1)
    syn2, mem2 = z(H2), z(H2)
    syn_r, mem_r = z(O), z(O)
    ys = []
    for t in range(T):
        i1 = x[t] @ w_in + b_in + out1 @ w_rec
        syn1 = ALPHA_SYN * syn1 + i1
        m1 = ALPHA_MEM * mem1 + (1 - ALPHA_MEM) * syn1
        s1 = (m1 > THRESH).astype(jnp.float32)
        mem1, out1 = m1 * (1 - s1), s1
        i2 = s1 @ w_12
        syn2 = ALPHA_SYN * syn2 + i2
        m2 = ALPHA_MEM * mem2 + (1 - ALPHA_MEM) * syn2
        s2 = (m2 > THRESH).astype(jnp.float32)
        mem2 = m2 * (1 - s2)
        ir = s2 @ w_out
        syn_r = ALPHA_SYN * syn_r + ir
        mem_r = ALPHA_MEM * mem_r + (1 - ALPHA_MEM) * syn_r
        ys.append(mem_r)
    return jnp.stack(ys, axis=0)


if __name__ == "__main__":
    key = jax.random.PRNGKey(0)
    k_x, k_win, k_bin, k_wrec, k_w12, k_wout = jax.random.split(key, 6)

    # Deterministic, fluctuation-driven-ish init (normal, 1/sqrt(fan_in) scale).
    x = jax.random.normal(k_x, (T_STEPS, BATCH, INPUT_DIM), jnp.float32) * 2.0
    w_in = jax.random.normal(k_win, (INPUT_DIM, HIDDEN_DIM), jnp.float32) / math.sqrt(INPUT_DIM)
    b_in = jax.random.normal(k_bin, (1, HIDDEN_DIM), jnp.float32) * 0.1
    w_rec = jax.random.normal(k_wrec, (HIDDEN_DIM, HIDDEN_DIM), jnp.float32) / math.sqrt(HIDDEN_DIM)
    w_12 = jax.random.normal(k_w12, (HIDDEN_DIM, HIDDEN_DIM), jnp.float32) / math.sqrt(HIDDEN_DIM)
    w_out = jax.random.normal(k_wout, (HIDDEN_DIM, OUTPUT_DIM), jnp.float32) / math.sqrt(HIDDEN_DIM)

    y = base_rsnn_forward(x, w_in, b_in, w_rec, w_12, w_out)
    y = jax.block_until_ready(y)

    y_ref = reference_forward(x, w_in, b_in, w_rec, w_12, w_out)
    assert y.shape == (T_STEPS, BATCH, OUTPUT_DIM)
    assert jnp.allclose(y, y_ref, atol=1e-4, rtol=1e-4), "mismatch vs reference"

    print("KERNEL_OK")
</pallas_src>

<mosaic_0001>
module attributes {stable_mosaic.version = 11 : i64} {
  func.func @rsnn_kernel(%arg0: i32, %arg1: memref<64x128xf32, #tpu.memory_space<vmem>>, %arg2: memref<128x128xf32, #tpu.memory_space<vmem>>, %arg3: memref<1x128xf32, #tpu.memory_space<vmem>>, %arg4: memref<128x128xf32, #tpu.memory_space<vmem>>, %arg5: memref<128x128xf32, #tpu.memory_space<vmem>>, %arg6: memref<128x128xf32, #tpu.memory_space<vmem>>, %arg7: memref<64x128xf32, #tpu.memory_space<vmem>>, %arg8: memref<64x128xf32, #tpu.memory_space<vmem>>) attributes {dimension_semantics = [#tpu.dimension_semantics<arbitrary>], iteration_bounds = array<i64: 1>, scalar_prefetch = 0 : i64, scratch_operands = 1 : i64, tpu.core_type = #tpu.core_type<tc>, window_params = [{pipeline_mode = #tpu.pipeline_mode<synchronous>, transform_indices = @transform_0, window_bounds = array<i64: 64, 128>}, {pipeline_mode = #tpu.pipeline_mode<synchronous>, transform_indices = @transform_1, window_bounds = array<i64: 128, 128>}, {pipeline_mode = #tpu.pipeline_mode<synchronous>, transform_indices = @transform_2, window_bounds = array<i64: 1, 128>}, {pipeline_mode = #tpu.pipeline_mode<synchronous>, transform_indices = @transform_3, window_bounds = array<i64: 128, 128>}, {pipeline_mode = #tpu.pipeline_mode<synchronous>, transform_indices = @transform_4, window_bounds = array<i64: 128, 128>}, {pipeline_mode = #tpu.pipeline_mode<synchronous>, transform_indices = @transform_5, window_bounds = array<i64: 128, 128>}, {pipeline_mode = #tpu.pipeline_mode<synchronous>, transform_indices = @transform_6, window_bounds = array<i64: 64, 128>}]} {
    %c0 = arith.constant 0 : index
    %c0_0 = arith.constant 0 : index
    %0 = vector.load %arg1[%c0, %c0_0] : memref<64x128xf32, #tpu.memory_space<vmem>>, vector<64x128xf32>
    %c0_1 = arith.constant 0 : index
    %c0_2 = arith.constant 0 : index
    %1 = vector.load %arg2[%c0_1, %c0_2] : memref<128x128xf32, #tpu.memory_space<vmem>>, vector<128x128xf32>
    %cst = arith.constant dense<0.000000e+00> : vector<64x128xf32>
    %2 = tpu.matmul %0, %1, %cst {dimension_numbers = #tpu.dot_dimension_numbers<[1], [0], [0], [1], [0, 0, 1, 1], [], []>} : vector<64x128xf32>, vector<128x128xf32>, vector<64x128xf32> -> vector<64x128xf32>
    %c0_3 = arith.constant 0 : index
    %c0_4 = arith.constant 0 : index
    %3 = vector.load %arg3[%c0_3, %c0_4] : memref<1x128xf32, #tpu.memory_space<vmem>>, vector<1x128xf32>
    %4 = vector.broadcast %3 : vector<1x128xf32> to vector<64x128xf32>
    %5 = arith.addf %2, %4 : vector<64x128xf32>
    %c0_5 = arith.constant 0 : index
    %c0_6 = arith.constant 0 : index
    %6 = vector.load %arg8[%c0_5, %c0_6] : memref<64x128xf32, #tpu.memory_space<vmem>>, vector<64x128xf32>
    tpu.vector_store %arg8[%c0_5, %c0_6], %5 {strides = array<i32>} : memref<64x128xf32, #tpu.memory_space<vmem>>, vector<64x128xf32>,
    %cst_7 = arith.constant 0.000000e+00 : f32
    %7 = vector.broadcast %cst_7 : f32 to vector<8x128xf32>
    %cst_8 = arith.constant 0.000000e+00 : f32
    %8 = vector.broadcast %cst_8 : f32 to vector<8x128xf32>
    %cst_9 = arith.constant 0.000000e+00 : f32
    %9 = vector.broadcast %cst_9 : f32 to vector<8x128xf32>
    %cst_10 = arith.constant 0.000000e+00 : f32
    %10 = vector.broadcast %cst_10 : f32 to vector<8x128xf32>
    %cst_11 = arith.constant 0.000000e+00 : f32
    %11 = vector.broadcast %cst_11 : f32 to vector<8x128xf32>
    %cst_12 = arith.constant 0.000000e+00 : f32
    %12 = vector.broadcast %cst_12 : f32 to vector<8x128xf32>
    %cst_13 = arith.constant 0.000000e+00 : f32
    %13 = vector.broadcast %cst_13 : f32 to vector<8x128xf32>
    %c0_14 = arith.constant 0 : index
    %c0_15 = arith.constant 0 : index
    %14 = vector.load %arg8[%c0_14, %c0_15] : memref<64x128xf32, #tpu.memory_space<vmem>>, vector<8x128xf32>
    %c0_16 = arith.constant 0 : index
    %c0_17 = arith.constant 0 : index
    %15 = vector.load %arg4[%c0_16, %c0_17] : memref<128x128xf32, #tpu.memory_space<vmem>>, vector<128x128xf32>
    %cst_18 = arith.constant dense<0.000000e+00> : vector<8x128xf32>
    %16 = tpu.matmul %9, %15, %cst_18 {dimension_numbers = #tpu.dot_dimension_numbers<[1], [0], [0], [1], [0, 0, 1, 1], [], []>} : vector<8x128xf32>, vector<128x128xf32>, vector<8x128xf32> -> vector<8x128xf32>
    %17 = arith.addf %14, %16 : vector<8x128xf32>
    %cst_19 = arith.constant 0.606530666 : f32
    %18 = vector.broadcast %cst_19 : f32 to vector<8x128xf32>
    %19 = arith.mulf %18, %7 : vector<8x128xf32>
    %20 = arith.addf %19, %17 : vector<8x128xf32>
    %cst_20 = arith.constant 0.904837429 : f32
    %21 = vector.broadcast %cst_20 : f32 to vector<8x128xf32>
    %22 = arith.mulf %21, %8 : vector<8x128xf32>
    %cst_21 = arith.constant 1.000000e+00 : f32
    %cst_22 = arith.constant 0.904837429 : f32
    %23 = arith.subf %cst_21, %cst_22 : f32
    %24 = vector.broadcast %23 : f32 to vector<8x128xf32>
    %25 = arith.mulf %24, %20 : vector<8x128xf32>
    %26 = arith.addf %22, %25 : vector<8x128xf32>
    %cst_23 = arith.constant 1.000000e+00 : f32
    %27 = vector.broadcast %cst_23 : f32 to vector<8x128xf32>
    %28 = arith.cmpf ogt, %26, %27 : vector<8x128xf32>
    %cst_24 = arith.constant 1.000000e+00 : f32
    %cst_25 = arith.constant 0.000000e+00 : f32
    %29 = vector.broadcast %cst_24 : f32 to vector<8x128xf32>
    %30 = vector.broadcast %cst_25 : f32 to vector<8x128xf32>
    %31 = arith.select %28, %29, %30 : vector<8x128xi1>, vector<8x128xf32>
    %cst_26 = arith.constant 1.000000e+00 : f32
    %32 = vector.broadcast %cst_26 : f32 to vector<8x128xf32>
    %33 = arith.subf %32, %31 : vector<8x128xf32>
    %34 = arith.mulf %26, %33 : vector<8x128xf32>
    %c0_27 = arith.constant 0 : index
    %c0_28 = arith.constant 0 : index
    %35 = vector.load %arg5[%c0_27, %c0_28] : memref<128x128xf32, #tpu.memory_space<vmem>>, vector<128x128xf32>
    %cst_29 = arith.constant dense<0.000000e+00> : vector<8x128xf32>
    %36 = tpu.matmul %31, %35, %cst_29 {dimension_numbers = #tpu.dot_dimension_numbers<[1], [0], [0], [1], [0, 0, 1, 1], [], []>} : vector<8x128xf32>, vector<128x128xf32>, vector<8x128xf32> -> vector<8x128xf32>
    %cst_30 = arith.constant 0.606530666 : f32
    %37 = vector.broadcast %cst_30 : f32 to vector<8x128xf32>
    %38 = arith.mulf %37, %10 : vector<8x128xf32>
    %39 = arith.addf %38, %36 : vector<8x128xf32>
    %cst_31 = arith.constant 0.904837429 : f32
    %40 = vector.broadcast %cst_31 : f32 to vector<8x128xf32>
    %41 = arith.mulf %40, %11 : vector<8x128xf32>
    %cst_32 = arith.constant 1.000000e+00 : f32
    %cst_33 = arith.constant 0.904837429 : f32
    %42 = arith.subf %cst_32, %cst_33 : f32
    %43 = vector.broadcast %42 : f32 to vector<8x128xf32>
    %44 = arith.mulf %43, %39 : vector<8x128xf32>
    %45 = arith.addf %41, %44 : vector<8x128xf32>
    %cst_34 = arith.constant 1.000000e+00 : f32
    %46 = vector.broadcast %cst_34 : f32 to vector<8x128xf32>
    %47 = arith.cmpf ogt, %45, %46 : vector<8x128xf32>
    %cst_35 = arith.constant 1.000000e+00 : f32
    %cst_36 = arith.constant 0.000000e+00 : f32
    %48 = vector.broadcast %cst_35 : f32 to vector<8x128xf32>
    %49 = vector.broadcast %cst_36 : f32 to vector<8x128xf32>
    %50 = arith.select %47, %48, %49 : vector<8x128xi1>, vector<8x128xf32>
    %cst_37 = arith.constant 1.000000e+00 : f32
    %51 = vector.broadcast %cst_37 : f32 to vector<8x128xf32>
    %52 = arith.subf %51, %50 : vector<8x128xf32>
    %53 = arith.mulf %45, %52 : vector<8x128xf32>
    %c0_38 = arith.constant 0 : index
    %c0_39 = arith.constant 0 : index
    %54 = vector.load %arg6[%c0_38, %c0_39] : memref<128x128xf32, #tpu.memory_space<vmem>>, vector<128x128xf32>
    %cst_40 = arith.constant dense<0.000000e+00> : vector<8x128xf32>
    %55 = tpu.matmul %50, %54, %cst_40 {dimension_numbers = #tpu.dot_dimension_numbers<[1], [0], [0], [1], [0, 0, 1, 1], [], []>} : vector<8x128xf32>, vector<128x128xf32>, vector<8x128xf32> -> vector<8x128xf32>
    %cst_41 = arith.constant 0.606530666 : f32
    %56 = vector.broadcast %cst_41 : f32 to vector<8x128xf32>
    %57 = arith.mulf %56, %12 : vector<8x128xf32>
    %58 = arith.addf %57, %55 : vector<8x128xf32>
    %cst_42 = arith.constant 0.904837429 : f32
    %59 = vector.broadcast %cst_42 : f32 to vector<8x128xf32>
    %60 = arith.mulf %59, %13 : vector<8x128xf32>
    %cst_43 = arith.constant 1.000000e+00 : f32
    %cst_44 = arith.constant 0.904837429 : f32
    %61 = arith.subf %cst_43, %cst_44 : f32
    %62 = vector.broadcast %61 : f32 to vector<8x128xf32>
    %63 = arith.mulf %62, %58 : vector<8x128xf32>
    %64 = arith.addf %60, %63 : vector<8x128xf32>
    %c0_45 = arith.constant 0 : index
    %c0_46 = arith.constant 0 : index
    %65 = vector.load %arg7[%c0_45, %c0_46] : memref<64x128xf32, #tpu.memory_space<vmem>>, vector<8x128xf32>
    tpu.vector_store %arg7[%c0_45, %c0_46], %64 {strides = array<i32>} : memref<64x128xf32, #tpu.memory_space<vmem>>, vector<8x128xf32>,
    %c8 = arith.constant 8 : index
    %c0_47 = arith.constant 0 : index
    %66 = vector.load %arg8[%c8, %c0_47] : memref<64x128xf32, #tpu.memory_space<vmem>>, vector<8x128xf32>
    %c0_48 = arith.constant 0 : index
    %c0_49 = arith.constant 0 : index
    %67 = vector.load %arg4[%c0_48, %c0_49] : memref<128x128xf32, #tpu.memory_space<vmem>>, vector<128x128xf32>
    %cst_50 = arith.constant dense<0.000000e+00> : vector<8x128xf32>
    %68 = tpu.matmul %31, %67, %cst_50 {dimension_numbers = #tpu.dot_dimension_numbers<[1], [0], [0], [1], [0, 0, 1, 1], [], []>} : vector<8x128xf32>, vector<128x128xf32>, vector<8x128xf32> -> vector<8x128xf32>
    %69 = arith.addf %66, %68 : vector<8x128xf32>
    %cst_51 = arith.constant 0.606530666 : f32
    %70 = vector.broadcast %cst_51 : f32 to vector<8x128xf32>
    %71 = arith.mulf %70, %20 : vector<8x128xf32>
    %72 = arith.addf %71, %69 : vector<8x128xf32>
    %cst_52 = arith.constant 0.904837429 : f32
    %73 = vector.broadcast %cst_52 : f32 to vector<8x128xf32>
    %74 = arith.mulf %73, %34 : vector<8x128xf32>
    %cst_53 = arith.constant 1.000000e+00 : f32
    %cst_54 = arith.constant 0.904837429 : f32
    %75 = arith.subf %cst_53, %cst_54 : f32
    %76 = vector.broadcast %75 : f32 to vector<8x128xf32>
    %77 = arith.mulf %76, %72 : vector<8x128xf32>
    %78 = arith.addf %74, %77 : vector<8x128xf32>
    %cst_55 = arith.constant 1.000000e+00 : f32
    %79 = vector.broadcast %cst_55 : f32 to vector<8x128xf32>
    %80 = arith.cmpf ogt, %78, %79 : vector<8x128xf32>
    %cst_56 = arith.constant 1.000000e+00 : f32
    %cst_57 = arith.constant 0.000000e+00 : f32
    %81 = vector.broadcast %cst_56 : f32 to vector<8x128xf32>
    %82 = vector.broadcast %cst_57 : f32 to vector<8x128xf32>
    %83 = arith.select %80, %81, %82 : vector<8x128xi1>, vector<8x128xf32>
    %cst_58 = arith.constant 1.000000e+00 : f32
    %84 = vector.broadcast %cst_58 : f32 to vector<8x128xf32>
    %85 = arith.subf %84, %83 : vector<8x128xf32>
    %86 = arith.mulf %78, %85 : vector<8x128xf32>
    %c0_59 = arith.constant 0 : index
    %c0_60 = arith.constant 0 : index
    %87 = vector.load %arg5[%c0_59, %c0_60] : memref<128x128xf32, #tpu.memory_space<vmem>>, vector<128x128xf32>
    %cst_61 = arith.constant dense<0.000000e+00> : vector<8x128xf32>
    %88 = tpu.matmul %83, %87, %cst_61 {dimension_numbers = #tpu.dot_dimension_numbers<[1], [0], [0], [1], [0, 0, 1, 1], [], []>} : vector<8x128xf32>, vector<128x128xf32>, vector<8x128xf32> -> vector<8x128xf32>
    %cst_62 = arith.constant 0.606530666 : f32
    %89 = vector.broadcast %cst_62 : f32 to vector<8x128xf32>
    %90 = arith.mulf %89, %39 : vector<8x128xf32>
    %91 = arith.addf %90, %88 : vector<8x128xf32>
    %cst_63 = arith.constant 0.904837429 : f32
    %92 = vector.broadcast %cst_63 : f32 to vector<8x128xf32>
    %93 = arith.mulf %92, %53 : vector<8x128xf32>
    %cst_64 = arith.constant 1.000000e+00 : f32
    %cst_65 = arith.constant 0.904837429 : f32
    %94 = arith.subf %cst_64, %cst_65 : f32
    %95 = vector.broadcast %94 : f32 to vector<8x128xf32>
    %96 = arith.mulf %95, %91 : vector<8x128xf32>
    %97 = arith.addf %93, %96 : vector<8x128xf32>
    %cst_66 = arith.constant 1.000000e+00 : f32
    %98 = vector.broadcast %cst_66 : f32 to vector<8x128xf32>
    %99 = arith.cmpf ogt, %97, %98 : vector<8x128xf32>
    %cst_67 = arith.constant 1.000000e+00 : f32
    %cst_68 = arith.constant 0.000000e+00 : f32
    %100 = vector.broadcast %cst_67 : f32 to vector<8x128xf32>
    %101 = vector.broadcast %cst_68 : f32 to vector<8x128xf32>
    %102 = arith.select %99, %100, %101 : vector<8x128xi1>, vector<8x128xf32>
    %cst_69 = arith.constant 1.000000e+00 : f32
    %103 = vector.broadcast %cst_69 : f32 to vector<8x128xf32>
    %104 = arith.subf %103, %102 : vector<8x128xf32>
    %105 = arith.mulf %97, %104 : vector<8x128xf32>
    %c0_70 = arith.constant 0 : index
    %c0_71 = arith.constant 0 : index
    %106 = vector.load %arg6[%c0_70, %c0_71] : memref<128x128xf32, #tpu.memory_space<vmem>>, vector<128x128xf32>
    %cst_72 = arith.constant dense<0.000000e+00> : vector<8x128xf32>
    %107 = tpu.matmul %102, %106, %cst_72 {dimension_numbers = #tpu.dot_dimension_numbers<[1], [0], [0], [1], [0, 0, 1, 1], [], []>} : vector<8x128xf32>, vector<128x128xf32>, vector<8x128xf32> -> vector<8x128xf32>
    %cst_73 = arith.constant 0.606530666 : f32
    %108 = vector.broadcast %cst_73 : f32 to vector<8x128xf32>
    %109 = arith.mulf %108, %58 : vector<8x128xf32>
    %110 = arith.addf %109, %107 : vector<8x128xf32>
    %cst_74 = arith.constant 0.904837429 : f32
    %111 = vector.broadcast %cst_74 : f32 to vector<8x128xf32>
    %112 = arith.mulf %111, %64 : vector<8x128xf32>
    %cst_75 = arith.constant 1.000000e+00 : f32
    %cst_76 = arith.constant 0.904837429 : f32
    %113 = arith.subf %cst_75, %cst_76 : f32
    %114 = vector.broadcast %113 : f32 to vector<8x128xf32>
    %115 = arith.mulf %114, %110 : vector<8x128xf32>
    %116 = arith.addf %112, %115 : vector<8x128xf32>
    %c8_77 = arith.constant 8 : index
    %c0_78 = arith.constant 0 : index
    %117 = vector.load %arg7[%c8_77, %c0_78] : memref<64x128xf32, #tpu.memory_space<vmem>>, vector<8x128xf32>
    tpu.vector_store %arg7[%c8_77, %c0_78], %116 {strides = array<i32>} : memref<64x128xf32, #tpu.memory_space<vmem>>, vector<8x128xf32>,
    %c16 = arith.constant 16 : index
    %c0_79 = arith.constant 0 : index
    %118 = vector.load %arg8[%c16, %c0_79] : memref<64x128xf32, #tpu.memory_space<vmem>>, vector<8x128xf32>
    %c0_80 = arith.constant 0 : index
    %c0_81 = arith.constant 0 : index
    %119 = vector.load %arg4[%c0_80, %c0_81] : memref<128x128xf32, #tpu.memory_space<vmem>>, vector<128x128xf32>
    %cst_82 = arith.constant dense<0.000000e+00> : vector<8x128xf32>
    %120 = tpu.matmul %83, %119, %cst_82 {dimension_numbers = #tpu.dot_dimension_numbers<[1], [0], [0], [1], [0, 0, 1, 1], [], []>} : vector<8x128xf32>, vector<128x128xf32>, vector<8x128xf32> -> vector<8x128xf32>
    %121 = arith.addf %118, %120 : vector<8x128xf32>
    %cst_83 = arith.constant 0.606530666 : f32
    %122 = vector.broadcast %cst_83 : f32 to vector<8x128xf32>
    %123 = arith.mulf %122, %72 : vector<8x128xf32>
    %124 = arith.addf %123, %121 : vector<8x128xf32>
    %cst_84 = arith.constant 0.904837429 : f32
    %125 = vector.broadcast %cst_84 : f32 to vector<8x128xf32>
    %126 = arith.mulf %125, %86 : vector<8x128xf32>
    %cst_85 = arith.constant 1.000000e+00 : f32
    %cst_86 = arith.constant 0.904837429 : f32
    %127 = arith.subf %cst_85, %cst_86 : f32
    %128 = vector.broadcast %127 : f32 to vector<8x128xf32>
    %129 = arith.mulf %128, %124 : vector<8x128xf32>
    %130 = arith.addf %126, %129 : vector<8x128xf32>
    %cst_87 = arith.constant 1.000000e+00 : f32
    %131 = vector.broadcast %cst_87 : f32 to vector<8x128xf32>
    %132 = arith.cmpf ogt, %130, %131 : vector<8x128xf32>
    %cst_88 = arith.constant 1.000000e+00 : f32
    %cst_89 = arith.constant 0.000000e+00 : f32
    %133 = vector.broadcast %cst_88 : f32 to vector<8x128xf32>
    %134 = vector.broadcast %cst_89 : f32 to vector<8x128xf32>
    %135 = arith.select %132, %133, %134 : vector<8x128xi1>, vector<8x128xf32>
    %cst_90 = arith.constant 1.000000e+00 : f32
    %136 = vector.broadcast %cst_90 : f32 to vector<8x128xf32>
    %137 = arith.subf %136, %135 : vector<8x128xf32>
    %138 = arith.mulf %130, %137 : vector<8x128xf32>
    %c0_91 = arith.constant 0 : index
    %c0_92 = arith.constant 0 : index
    %139 = vector.load %arg5[%c0_91, %c0_92] : memref<128x128xf32, #tpu.memory_space<vmem>>, vector<128x128xf32>
    %cst_93 = arith.constant dense<0.000000e+00> : vector<8x128xf32>
    %140 = tpu.matmul %135, %139, %cst_93 {dimension_numbers = #tpu.dot_dimension_numbers<[1], [0], [0], [1], [0, 0, 1, 1], [], []>} : vector<8x128xf32>, vector<128x128xf32>, vector<8x128xf32> -> vector<8x128xf32>
    %cst_94 = arith.constant 0.606530666 : f32
    %141 = vector.broadcast %cst_94 : f32 to vector<8x128xf32>
    %142 = arith.mulf %141, %91 : vector<8x128xf32>
    %143 = arith.addf %142, %140 : vector<8x128xf32>
    %cst_95 = arith.constant 0.904837429 : f32
    %144 = vector.broadcast %cst_95 : f32 to vector<8x128xf32>
    %145 = arith.mulf %144, %105 : vector<8x128xf32>
    %cst_96 = arith.constant 1.000000e+00 : f32
    %cst_97 = arith.constant 0.904837429 : f32
    %146 = arith.subf %cst_96, %cst_97 : f32
    %147 = vector.broadcast %146 : f32 to vector<8x128xf32>
    %148 = arith.mulf %147, %143 : vector<8x128xf32>
    %149 = arith.addf %145, %148 : vector<8x128xf32>
    %cst_98 = arith.constant 1.000000e+00 : f32
    %150 = vector.broadcast %cst_98 : f32 to vector<8x128xf32>
    %151 = arith.cmpf ogt, %149, %150 : vector<8x128xf32>
    %cst_99 = arith.constant 1.000000e+00 : f32
    %cst_100 = arith.constant 0.000000e+00 : f32
    %152 = vector.broadcast %cst_99 : f32 to vector<8x128xf32>
    %153 = vector.broadcast %cst_100 : f32 to vector<8x128xf32>
    %154 = arith.select %151, %152, %153 : vector<8x128xi1>, vector<8x128xf32>
    %cst_101 = arith.constant 1.000000e+00 : f32
    %155 = vector.broadcast %cst_101 : f32 to vector<8x128xf32>
    %156 = arith.subf %155, %154 : vector<8x128xf32>
    %157 = arith.mulf %149, %156 : vector<8x128xf32>
    %c0_102 = arith.constant 0 : index
    %c0_103 = arith.constant 0 : index
    %158 = vector.load %arg6[%c0_102, %c0_103] : memref<128x128xf32, #tpu.memory_space<vmem>>, vector<128x128xf32>
    %cst_104 = arith.constant dense<0.000000e+00> : vector<8x128xf32>
    %159 = tpu.matmul %154, %158, %cst_104 {dimension_numbers = #tpu.dot_dimension_numbers<[1], [0], [0], [1], [0, 0, 1, 1], [], []>} : vector<8x128xf32>, vector<128x128xf32>, vector<8x128xf32> -> vector<8x128xf32>
    %cst_105 = arith.constant 0.606530666 : f32
    %160 = vector.broadcast %cst_105 : f32 to vector<8x128xf32>
    %161 = arith.mulf %160, %110 : vector<8x128xf32>
    %162 = arith.addf %161, %159 : vector<8x128xf32>
    %cst_106 = arith.constant 0.904837429 : f32
    %163 = vector.broadcast %cst_106 : f32 to vector<8x128xf32>
    %164 = arith.mulf %163, %116 : vector<8x128xf32>
    %cst_107 = arith.constant 1.000000e+00 : f32
    %cst_108 = arith.constant 0.904837429 : f32
    %165 = arith.subf %cst_107, %cst_108 : f32
    %166 = vector.broadcast %165 : f32 to vector<8x128xf32>
    %167 = arith.mulf %166, %162 : vector<8x128xf32>
    %168 = arith.addf %164, %167 : vector<8x128xf32>
    %c16_109 = arith.constant 16 : index
    %c0_110 = arith.constant 0 : index
    %169 = vector.load %arg7[%c16_109, %c0_110] : memref<64x128xf32, #tpu.memory_space<vmem>>, vector<8x128xf32>
    tpu.vector_store %arg7[%c16_109, %c0_110], %168 {strides = array<i32>} : memref<64x128xf32, #tpu.memory_space<vmem>>, vector<8x128xf32>,
    %c24 = arith.constant 24 : index
    %c0_111 = arith.constant 0 : index
    %170 = vector.load %arg8[%c24, %c0_111] : memref<64x128xf32, #tpu.memory_space<vmem>>, vector<8x128xf32>
    %c0_112 = arith.constant 0 : index
    %c0_113 = arith.constant 0 : index
    %171 = vector.load %arg4[%c0_112, %c0_113] : memref<128x128xf32, #tpu.memory_space<vmem>>, vector<128x128xf32>
    %cst_114 = arith.constant dense<0.000000e+00> : vector<8x128xf32>
    %172 = tpu.matmul %135, %171, %cst_114 {dimension_numbers = #tpu.dot_dimension_numbers<[1], [0], [0], [1], [0, 0, 1, 1], [], []>} : vector<8x128xf32>, vector<128x128xf32>, vector<8x128xf32> -> vector<8x128xf32>
    %173 = arith.addf %170, %172 : vector<8x128xf32>
    %cst_115 = arith.constant 0.606530666 : f32
    %174 = vector.broadcast %cst_115 : f32 to vector<8x128xf32>
    %175 = arith.mulf %174, %124 : vector<8x128xf32>
    %176 = arith.addf %175, %173 : vector<8x128xf32>
    %cst_116 = arith.constant 0.904837429 : f32
    %177 = vector.broadcast %cst_116 : f32 to vector<8x128xf32>
    %178 = arith.mulf %177, %138 : vector<8x128xf32>
    %cst_117 = arith.constant 1.000000e+00 : f32
    %cst_118 = arith.constant 0.904837429 : f32
    %179 = arith.subf %cst_117, %cst_118 : f32
    %180 = vector.broadcast %179 : f32 to vector<8x128xf32>
    %181 = arith.mulf %180, %176 : vector<8x128xf32>
    %182 = arith.addf %178, %181 : vector<8x128xf32>
    %cst_119 = arith.constant 1.000000e+00 : f32
    %183 = vector.broadcast %cst_119 : f32 to vector<8x128xf32>
    %184 = arith.cmpf ogt, %182, %183 : vector<8x128xf32>
    %cst_120 = arith.constant 1.000000e+00 : f32
    %cst_121 = arith.constant 0.000000e+00 : f32
    %185 = vector.broadcast %cst_120 : f32 to vector<8x128xf32>
    %186 = vector.broadcast %cst_121 : f32 to vector<8x128xf32>
    %187 = arith.select %184, %185, %186 : vector<8x128xi1>, vector<8x128xf32>
    %cst_122 = arith.constant 1.000000e+00 : f32
    %188 = vector.broadcast %cst_122 : f32 to vector<8x128xf32>
    %189 = arith.subf %188, %187 : vector<8x128xf32>
    %190 = arith.mulf %182, %189 : vector<8x128xf32>
    %c0_123 = arith.constant 0 : index
    %c0_124 = arith.constant 0 : index
    %191 = vector.load %arg5[%c0_123, %c0_124] : memref<128x128xf32, #tpu.memory_space<vmem>>, vector<128x128xf32>
    %cst_125 = arith.constant dense<0.000000e+00> : vector<8x128xf32>
    %192 = tpu.matmul %187, %191, %cst_125 {dimension_numbers = #tpu.dot_dimension_numbers<[1], [0], [0], [1], [0, 0, 1, 1], [], []>} : vector<8x128xf32>, vector<128x128xf32>, vector<8x128xf32> -> vector<8x128xf32>
    %cst_126 = arith.constant 0.606530666 : f32
    %193 = vector.broadcast %cst_126 : f32 to vector<8x128xf32>
    %194 = arith.mulf %193, %143 : vector<8x128xf32>
    %195 = arith.addf %194, %192 : vector<8x128xf32>
    %cst_127 = arith.constant 0.904837429 : f32
    %196 = vector.broadcast %cst_127 : f32 to vector<8x128xf32>
    %197 = arith.mulf %196, %157 : vector<8x128xf32>
    %cst_128 = arith.constant 1.000000e+00 : f32
    %cst_129 = arith.constant 0.904837429 : f32
    %198 = arith.subf %cst_128, %cst_129 : f32
    %199 = vector.broadcast %198 : f32 to vector<8x128xf32>
    %200 = arith.mulf %199, %195 : vector<8x128xf32>
    %201 = arith.addf %197, %200 : vector<8x128xf32>
    %cst_130 = arith.constant 1.000000e+00 : f32
    %202 = vector.broadcast %cst_130 : f32 to vector<8x128xf32>
    %203 = arith.cmpf ogt, %201, %202 : vector<8x128xf32>
    %cst_131 = arith.constant 1.000000e+00 : f32
    %cst_132 = arith.constant 0.000000e+00 : f32
    %204 = vector.broadcast %cst_131 : f32 to vector<8x128xf32>
    %205 = vector.broadcast %cst_132 : f32 to vector<8x128xf32>
    %206 = arith.select %203, %204, %205 : vector<8x128xi1>, vector<8x128xf32>
    %cst_133 = arith.constant 1.000000e+00 : f32
    %207 = vector.broadcast %cst_133 : f32 to vector<8x128xf32>
    %208 = arith.subf %207, %206 : vector<8x128xf32>
    %209 = arith.mulf %201, %208 : vector<8x128xf32>
    %c0_134 = arith.constant 0 : index
    %c0_135 = arith.constant 0 : index
    %210 = vector.load %arg6[%c0_134, %c0_135] : memref<128x128xf32, #tpu.memory_space<vmem>>, vector<128x128xf32>
    %cst_136 = arith.constant dense<0.000000e+00> : vector<8x128xf32>
    %211 = tpu.matmul %206, %210, %cst_136 {dimension_numbers = #tpu.dot_dimension_numbers<[1], [0], [0], [1], [0, 0, 1, 1], [], []>} : vector<8x128xf32>, vector<128x128xf32>, vector<8x128xf32> -> vector<8x128xf32>
    %cst_137 = arith.constant 0.606530666 : f32
    %212 = vector.broadcast %cst_137 : f32 to vector<8x128xf32>
    %213 = arith.mulf %212, %162 : vector<8x128xf32>
    %214 = arith.addf %213, %211 : vector<8x128xf32>
    %cst_138 = arith.constant 0.904837429 : f32
    %215 = vector.broadcast %cst_138 : f32 to vector<8x128xf32>
    %216 = arith.mulf %215, %168 : vector<8x128xf32>
    %cst_139 = arith.constant 1.000000e+00 : f32
    %cst_140 = arith.constant 0.904837429 : f32
    %217 = arith.subf %cst_139, %cst_140 : f32
    %218 = vector.broadcast %217 : f32 to vector<8x128xf32>
    %219 = arith.mulf %218, %214 : vector<8x128xf32>
    %220 = arith.addf %216, %219 : vector<8x128xf32>
    %c24_141 = arith.constant 24 : index
    %c0_142 = arith.constant 0 : index
    %221 = vector.load %arg7[%c24_141, %c0_142] : memref<64x128xf32, #tpu.memory_space<vmem>>, vector<8x128xf32>
    tpu.vector_store %arg7[%c24_141, %c0_142], %220 {strides = array<i32>} : memref<64x128xf32, #tpu.memory_space<vmem>>, vector<8x128xf32>,
    %c32 = arith.constant 32 : index
    %c0_143 = arith.constant 0 : index
    %222 = vector.load %arg8[%c32, %c0_143] : memref<64x128xf32, #tpu.memory_space<vmem>>, vector<8x128xf32>
    %c0_144 = arith.constant 0 : index
    %c0_145 = arith.constant 0 : index
    %223 = vector.load %arg4[%c0_144, %c0_145] : memref<128x128xf32, #tpu.memory_space<vmem>>, vector<128x128xf32>
    %cst_146 = arith.constant dense<0.000000e+00> : vector<8x128xf32>
    %224 = tpu.matmul %187, %223, %cst_146 {dimension_numbers = #tpu.dot_dimension_numbers<[1], [0], [0], [1], [0, 0, 1, 1], [], []>} : vector<8x128xf32>, vector<128x128xf32>, vector<8x128xf32> -> vector<8x128xf32>
    %225 = arith.addf %222, %224 : vector<8x128xf32>
    %cst_147 = arith.constant 0.606530666 : f32
    %226 = vector.broadcast %cst_147 : f32 to vector<8x128xf32>
    %227 = arith.mulf %226, %176 : vector<8x128xf32>
    %228 = arith.addf %227, %225 : vector<8x128xf32>
    %cst_148 = arith.constant 0.904837429 : f32
    %229 = vector.broadcast %cst_148 : f32 to vector<8x128xf32>
    %230 = arith.mulf %229, %190 : vector<8x128xf32>
    %cst_149 = arith.constant 1.000000e+00 : f32
    %cst_150 = arith.constant 0.904837429 : f32
    %231 = arith.subf %cst_149, %cst_150 : f32
    %232 = vector.broadcast %231 : f32 to vector<8x128xf32>
    %233 = arith.mulf %232, %228 : vector<8x128xf32>
    %234 = arith.addf %230, %233 : vector<8x128xf32>
    %cst_151 = arith.constant 1.000000e+00 : f32
    %235 = vector.broadcast %cst_151 : f32 to vector<8x128xf32>
    %236 = arith.cmpf ogt, %234, %235 : vector<8x128xf32>
    %cst_152 = arith.constant 1.000000e+00 : f32
    %cst_153 = arith.constant 0.000000e+00 : f32
    %237 = vector.broadcast %cst_152 : f32 to vector<8x128xf32>
    %238 = vector.broadcast %cst_153 : f32 to vector<8x128xf32>
    %239 = arith.select %236, %237, %238 : vector<8x128xi1>, vector<8x128xf32>
    %cst_154 = arith.constant 1.000000e+00 : f32
    %240 = vector.broadcast %cst_154 : f32 to vector<8x128xf32>
    %241 = arith.subf %240, %239 : vector<8x128xf32>
    %242 = arith.mulf %234, %241 : vector<8x128xf32>
    %c0_155 = arith.constant 0 : index
    %c0_156 = arith.constant 0 : index
    %243 = vector.load %arg5[%c0_155, %c0_156] : memref<128x128xf32, #tpu.memory_space<vmem>>, vector<128x128xf32>
    %cst_157 = arith.constant dense<0.000000e+00> : vector<8x128xf32>
    %244 = tpu.matmul %239, %243, %cst_157 {dimension_numbers = #tpu.dot_dimension_numbers<[1], [0], [0], [1], [0, 0, 1, 1], [], []>} : vector<8x128xf32>, vector<128x128xf32>, vector<8x128xf32> -> vector<8x128xf32>
    %cst_158 = arith.constant 0.606530666 : f32
    %245 = vector.broadcast %cst_158 : f32 to vector<8x128xf32>
    %246 = arith.mulf %245, %195 : vector<8x128xf32>
    %247 = arith.addf %246, %244 : vector<8x128xf32>
    %cst_159 = arith.constant 0.904837429 : f32
    %248 = vector.broadcast %cst_159 : f32 to vector<8x128xf32>
    %249 = arith.mulf %248, %209 : vector<8x128xf32>
    %cst_160 = arith.constant 1.000000e+00 : f32
    %cst_161 = arith.constant 0.904837429 : f32
    %250 = arith.subf %cst_160, %cst_161 : f32
    %251 = vector.broadcast %250 : f32 to vector<8x128xf32>
    %252 = arith.mulf %251, %247 : vector<8x128xf32>
    %253 = arith.addf %249, %252 : vector<8x128xf32>
    %cst_162 = arith.constant 1.000000e+00 : f32
    %254 = vector.broadcast %cst_162 : f32 to vector<8x128xf32>
    %255 = arith.cmpf ogt, %253, %254 : vector<8x128xf32>
    %cst_163 = arith.constant 1.000000e+00 : f32
    %cst_164 = arith.constant 0.000000e+00 : f32
    %256 = vector.broadcast %cst_163 : f32 to vector<8x128xf32>
    %257 = vector.broadcast %cst_164 : f32 to vector<8x128xf32>
    %258 = arith.select %255, %256, %257 : vector<8x128xi1>, vector<8x128xf32>
    %cst_165 = arith.constant 1.000000e+00 : f32
    %259 = vector.broadcast %cst_165 : f32 to vector<8x128xf32>
    %260 = arith.subf %259, %258 : vector<8x128xf32>
    %261 = arith.mulf %253, %260 : vector<8x128xf32>
    %c0_166 = arith.constant 0 : index
    %c0_167 = arith.constant 0 : index
    %262 = vector.load %arg6[%c0_166, %c0_167] : memref<128x128xf32, #tpu.memory_space<vmem>>, vector<128x128xf32>
    %cst_168 = arith.constant dense<0.000000e+00> : vector<8x128xf32>
    %263 = tpu.matmul %258, %262, %cst_168 {dimension_numbers = #tpu.dot_dimension_numbers<[1], [0], [0], [1], [0, 0, 1, 1], [], []>} : vector<8x128xf32>, vector<128x128xf32>, vector<8x128xf32> -> vector<8x128xf32>
    %cst_169 = arith.constant 0.606530666 : f32
    %264 = vector.broadcast %cst_169 : f32 to vector<8x128xf32>
    %265 = arith.mulf %264, %214 : vector<8x128xf32>
    %266 = arith.addf %265, %263 : vector<8x128xf32>
    %cst_170 = arith.constant 0.904837429 : f32
    %267 = vector.broadcast %cst_170 : f32 to vector<8x128xf32>
    %268 = arith.mulf %267, %220 : vector<8x128xf32>
    %cst_171 = arith.constant 1.000000e+00 : f32
    %cst_172 = arith.constant 0.904837429 : f32
    %269 = arith.subf %cst_171, %cst_172 : f32
    %270 = vector.broadcast %269 : f32 to vector<8x128xf32>
    %271 = arith.mulf %270, %266 : vector<8x128xf32>
    %272 = arith.addf %268, %271 : vector<8x128xf32>
    %c32_173 = arith.constant 32 : index
    %c0_174 = arith.constant 0 : index
    %273 = vector.load %arg7[%c32_173, %c0_174] : memref<64x128xf32, #tpu.memory_space<vmem>>, vector<8x128xf32>
    tpu.vector_store %arg7[%c32_173, %c0_174], %272 {strides = array<i32>} : memref<64x128xf32, #tpu.memory_space<vmem>>, vector<8x128xf32>,
    %c40 = arith.constant 40 : index
    %c0_175 = arith.constant 0 : index
    %274 = vector.load %arg8[%c40, %c0_175] : memref<64x128xf32, #tpu.memory_space<vmem>>, vector<8x128xf32>
    %c0_176 = arith.constant 0 : index
    %c0_177 = arith.constant 0 : index
    %275 = vector.load %arg4[%c0_176, %c0_177] : memref<128x128xf32, #tpu.memory_space<vmem>>, vector<128x128xf32>
    %cst_178 = arith.constant dense<0.000000e+00> : vector<8x128xf32>
    %276 = tpu.matmul %239, %275, %cst_178 {dimension_numbers = #tpu.dot_dimension_numbers<[1], [0], [0], [1], [0, 0, 1, 1], [], []>} : vector<8x128xf32>, vector<128x128xf32>, vector<8x128xf32> -> vector<8x128xf32>
    %277 = arith.addf %274, %276 : vector<8x128xf32>
    %cst_179 = arith.constant 0.606530666 : f32
    %278 = vector.broadcast %cst_179 : f32 to vector<8x128xf32>
    %279 = arith.mulf %278, %228 : vector<8x128xf32>
    %280 = arith.addf %279, %277 : vector<8x128xf32>
    %cst_180 = arith.constant 0.904837429 : f32
    %281 = vector.broadcast %cst_180 : f32 to vector<8x128xf32>
    %282 = arith.mulf %281, %242 : vector<8x128xf32>
    %cst_181 = arith.constant 1.000000e+00 : f32
    %cst_182 = arith.constant 0.904837429 : f32
    %283 = arith.subf %cst_181, %cst_182 : f32
    %284 = vector.broadcast %283 : f32 to vector<8x128xf32>
    %285 = arith.mulf %284, %280 : vector<8x128xf32>
    %286 = arith.addf %282, %285 : vector<8x128xf32>
    %cst_183 = arith.constant 1.000000e+00 : f32
    %287 = vector.broadcast %cst_183 : f32 to vector<8x128xf32>
    %288 = arith.cmpf ogt, %286, %287 : vector<8x128xf32>
    %cst_184 = arith.constant 1.000000e+00 : f32
    %cst_185 = arith.constant 0.000000e+00 : f32
    %289 = vector.broadcast %cst_184 : f32 to vector<8x128xf32>
    %290 = vector.broadcast %cst_185 : f32 to vector<8x128xf32>
    %291 = arith.select %288, %289, %290 : vector<8x128xi1>, vector<8x128xf32>
    %cst_186 = arith.constant 1.000000e+00 : f32
    %292 = vector.broadcast %cst_186 : f32 to vector<8x128xf32>
    %293 = arith.subf %292, %291 : vector<8x128xf32>
    %294 = arith.mulf %286, %293 : vector<8x128xf32>
    %c0_187 = arith.constant 0 : index
    %c0_188 = arith.constant 0 : index
    %295 = vector.load %arg5[%c0_187, %c0_188] : memref<128x128xf32, #tpu.memory_space<vmem>>, vector<128x128xf32>
    %cst_189 = arith.constant dense<0.000000e+00> : vector<8x128xf32>
    %296 = tpu.matmul %291, %295, %cst_189 {dimension_numbers = #tpu.dot_dimension_numbers<[1], [0], [0], [1], [0, 0, 1, 1], [], []>} : vector<8x128xf32>, vector<128x128xf32>, vector<8x128xf32> -> vector<8x128xf32>
    %cst_190 = arith.constant 0.606530666 : f32
    %297 = vector.broadcast %cst_190 : f32 to vector<8x128xf32>
    %298 = arith.mulf %297, %247 : vector<8x128xf32>
    %299 = arith.addf %298, %296 : vector<8x128xf32>
    %cst_191 = arith.constant 0.904837429 : f32
    %300 = vector.broadcast %cst_191 : f32 to vector<8x128xf32>
    %301 = arith.mulf %300, %261 : vector<8x128xf32>
    %cst_192 = arith.constant 1.000000e+00 : f32
    %cst_193 = arith.constant 0.904837429 : f32
    %302 = arith.subf %cst_192, %cst_193 : f32
    %303 = vector.broadcast %302 : f32 to vector<8x128xf32>
    %304 = arith.mulf %303, %299 : vector<8x128xf32>
    %305 = arith.addf %301, %304 : vector<8x128xf32>
    %cst_194 = arith.constant 1.000000e+00 : f32
    %306 = vector.broadcast %cst_194 : f32 to vector<8x128xf32>
    %307 = arith.cmpf ogt, %305, %306 : vector<8x128xf32>
    %cst_195 = arith.constant 1.000000e+00 : f32
    %cst_196 = arith.constant 0.000000e+00 : f32
    %308 = vector.broadcast %cst_195 : f32 to vector<8x128xf32>
    %309 = vector.broadcast %cst_196 : f32 to vector<8x128xf32>
    %310 = arith.select %307, %308, %309 : vector<8x128xi1>, vector<8x128xf32>
    %cst_197 = arith.constant 1.000000e+00 : f32
    %311 = vector.broadcast %cst_197 : f32 to vector<8x128xf32>
    %312 = arith.subf %311, %310 : vector<8x128xf32>
    %313 = arith.mulf %305, %312 : vector<8x128xf32>
    %c0_198 = arith.constant 0 : index
    %c0_199 = arith.constant 0 : index
    %314 = vector.load %arg6[%c0_198, %c0_199] : memref<128x128xf32, #tpu.memory_space<vmem>>, vector<128x128xf32>
    %cst_200 = arith.constant dense<0.000000e+00> : vector<8x128xf32>
    %315 = tpu.matmul %310, %314, %cst_200 {dimension_numbers = #tpu.dot_dimension_numbers<[1], [0], [0], [1], [0, 0, 1, 1], [], []>} : vector<8x128xf32>, vector<128x128xf32>, vector<8x128xf32> -> vector<8x128xf32>
    %cst_201 = arith.constant 0.606530666 : f32
    %316 = vector.broadcast %cst_201 : f32 to vector<8x128xf32>
    %317 = arith.mulf %316, %266 : vector<8x128xf32>
    %318 = arith.addf %317, %315 : vector<8x128xf32>
    %cst_202 = arith.constant 0.904837429 : f32
    %319 = vector.broadcast %cst_202 : f32 to vector<8x128xf32>
    %320 = arith.mulf %319, %272 : vector<8x128xf32>
    %cst_203 = arith.constant 1.000000e+00 : f32
    %cst_204 = arith.constant 0.904837429 : f32
    %321 = arith.subf %cst_203, %cst_204 : f32
    %322 = vector.broadcast %321 : f32 to vector<8x128xf32>
    %323 = arith.mulf %322, %318 : vector<8x128xf32>
    %324 = arith.addf %320, %323 : vector<8x128xf32>
    %c40_205 = arith.constant 40 : index
    %c0_206 = arith.constant 0 : index
    %325 = vector.load %arg7[%c40_205, %c0_206] : memref<64x128xf32, #tpu.memory_space<vmem>>, vector<8x128xf32>
    tpu.vector_store %arg7[%c40_205, %c0_206], %324 {strides = array<i32>} : memref<64x128xf32, #tpu.memory_space<vmem>>, vector<8x128xf32>,
    %c48 = arith.constant 48 : index
    %c0_207 = arith.constant 0 : index
    %326 = vector.load %arg8[%c48, %c0_207] : memref<64x128xf32, #tpu.memory_space<vmem>>, vector<8x128xf32>
    %c0_208 = arith.constant 0 : index
    %c0_209 = arith.constant 0 : index
    %327 = vector.load %arg4[%c0_208, %c0_209] : memref<128x128xf32, #tpu.memory_space<vmem>>, vector<128x128xf32>
    %cst_210 = arith.constant dense<0.000000e+00> : vector<8x128xf32>
    %328 = tpu.matmul %291, %327, %cst_210 {dimension_numbers = #tpu.dot_dimension_numbers<[1], [0], [0], [1], [0, 0, 1, 1], [], []>} : vector<8x128xf32>, vector<128x128xf32>, vector<8x128xf32> -> vector<8x128xf32>
    %329 = arith.addf %326, %328 : vector<8x128xf32>
    %cst_211 = arith.constant 0.606530666 : f32
    %330 = vector.broadcast %cst_211 : f32 to vector<8x128xf32>
    %331 = arith.mulf %330, %280 : vector<8x128xf32>
    %332 = arith.addf %331, %329 : vector<8x128xf32>
    %cst_212 = arith.constant 0.904837429 : f32
    %333 = vector.broadcast %cst_212 : f32 to vector<8x128xf32>
    %334 = arith.mulf %333, %294 : vector<8x128xf32>
    %cst_213 = arith.constant 1.000000e+00 : f32
    %cst_214 = arith.constant 0.904837429 : f32
    %335 = arith.subf %cst_213, %cst_214 : f32
    %336 = vector.broadcast %335 : f32 to vector<8x128xf32>
    %337 = arith.mulf %336, %332 : vector<8x128xf32>
    %338 = arith.addf %334, %337 : vector<8x128xf32>
    %cst_215 = arith.constant 1.000000e+00 : f32
    %339 = vector.broadcast %cst_215 : f32 to vector<8x128xf32>
    %340 = arith.cmpf ogt, %338, %339 : vector<8x128xf32>
    %cst_216 = arith.constant 1.000000e+00 : f32
    %cst_217 = arith.constant 0.000000e+00 : f32
    %341 = vector.broadcast %cst_216 : f32 to vector<8x128xf32>
    %342 = vector.broadcast %cst_217 : f32 to vector<8x128xf32>
    %343 = arith.select %340, %341, %342 : vector<8x128xi1>, vector<8x128xf32>
    %cst_218 = arith.constant 1.000000e+00 : f32
    %344 = vector.broadcast %cst_218 : f32 to vector<8x128xf32>
    %345 = arith.subf %344, %343 : vector<8x128xf32>
    %346 = arith.mulf %338, %345 : vector<8x128xf32>
    %c0_219 = arith.constant 0 : index
    %c0_220 = arith.constant 0 : index
    %347 = vector.load %arg5[%c0_219, %c0_220] : memref<128x128xf32, #tpu.memory_space<vmem>>, vector<128x128xf32>
    %cst_221 = arith.constant dense<0.000000e+00> : vector<8x128xf32>
    %348 = tpu.matmul %343, %347, %cst_221 {dimension_numbers = #tpu.dot_dimension_numbers<[1], [0], [0], [1], [0, 0, 1, 1], [], []>} : vector<8x128xf32>, vector<128x128xf32>, vector<8x128xf32> -> vector<8x128xf32>
    %cst_222 = arith.constant 0.606530666 : f32
    %349 = vector.broadcast %cst_222 : f32 to vector<8x128xf32>
    %350 = arith.mulf %349, %299 : vector<8x128xf32>
    %351 = arith.addf %350, %348 : vector<8x128xf32>
    %cst_223 = arith.constant 0.904837429 : f32
    %352 = vector.broadcast %cst_223 : f32 to vector<8x128xf32>
    %353 = arith.mulf %352, %313 : vector<8x128xf32>
    %cst_224 = arith.constant 1.000000e+00 : f32
    %cst_225 = arith.constant 0.904837429 : f32
    %354 = arith.subf %cst_224, %cst_225 : f32
    %355 = vector.broadcast %354 : f32 to vector<8x128xf32>
    %356 = arith.mulf %355, %351 : vector<8x128xf32>
    %357 = arith.addf %353, %356 : vector<8x128xf32>
    %cst_226 = arith.constant 1.000000e+00 : f32
    %358 = vector.broadcast %cst_226 : f32 to vector<8x128xf32>
    %359 = arith.cmpf ogt, %357, %358 : vector<8x128xf32>
    %cst_227 = arith.constant 1.000000e+00 : f32
    %cst_228 = arith.constant 0.000000e+00 : f32
    %360 = vector.broadcast %cst_227 : f32 to vector<8x128xf32>
    %361 = vector.broadcast %cst_228 : f32 to vector<8x128xf32>
    %362 = arith.select %359, %360, %361 : vector<8x128xi1>, vector<8x128xf32>
    %cst_229 = arith.constant 1.000000e+00 : f32
    %363 = vector.broadcast %cst_229 : f32 to vector<8x128xf32>
    %364 = arith.subf %363, %362 : vector<8x128xf32>
    %365 = arith.mulf %357, %364 : vector<8x128xf32>
    %c0_230 = arith.constant 0 : index
    %c0_231 = arith.constant 0 : index
    %366 = vector.load %arg6[%c0_230, %c0_231] : memref<128x128xf32, #tpu.memory_space<vmem>>, vector<128x128xf32>
    %cst_232 = arith.constant dense<0.000000e+00> : vector<8x128xf32>
    %367 = tpu.matmul %362, %366, %cst_232 {dimension_numbers = #tpu.dot_dimension_numbers<[1], [0], [0], [1], [0, 0, 1, 1], [], []>} : vector<8x128xf32>, vector<128x128xf32>, vector<8x128xf32> -> vector<8x128xf32>
    %cst_233 = arith.constant 0.606530666 : f32
    %368 = vector.broadcast %cst_233 : f32 to vector<8x128xf32>
    %369 = arith.mulf %368, %318 : vector<8x128xf32>
    %370 = arith.addf %369, %367 : vector<8x128xf32>
    %cst_234 = arith.constant 0.904837429 : f32
    %371 = vector.broadcast %cst_234 : f32 to vector<8x128xf32>
    %372 = arith.mulf %371, %324 : vector<8x128xf32>
    %cst_235 = arith.constant 1.000000e+00 : f32
    %cst_236 = arith.constant 0.904837429 : f32
    %373 = arith.subf %cst_235, %cst_236 : f32
    %374 = vector.broadcast %373 : f32 to vector<8x128xf32>
    %375 = arith.mulf %374, %370 : vector<8x128xf32>
    %376 = arith.addf %372, %375 : vector<8x128xf32>
    %c48_237 = arith.constant 48 : index
    %c0_238 = arith.constant 0 : index
    %377 = vector.load %arg7[%c48_237, %c0_238] : memref<64x128xf32, #tpu.memory_space<vmem>>, vector<8x128xf32>
    tpu.vector_store %arg7[%c48_237, %c0_238], %376 {strides = array<i32>} : memref<64x128xf32, #tpu.memory_space<vmem>>, vector<8x128xf32>,
    %c56 = arith.constant 56 : index
    %c0_239 = arith.constant 0 : index
    %378 = vector.load %arg8[%c56, %c0_239] : memref<64x128xf32, #tpu.memory_space<vmem>>, vector<8x128xf32>
    %c0_240 = arith.constant 0 : index
    %c0_241 = arith.constant 0 : index
    %379 = vector.load %arg4[%c0_240, %c0_241] : memref<128x128xf32, #tpu.memory_space<vmem>>, vector<128x128xf32>
    %cst_242 = arith.constant dense<0.000000e+00> : vector<8x128xf32>
    %380 = tpu.matmul %343, %379, %cst_242 {dimension_numbers = #tpu.dot_dimension_numbers<[1], [0], [0], [1], [0, 0, 1, 1], [], []>} : vector<8x128xf32>, vector<128x128xf32>, vector<8x128xf32> -> vector<8x128xf32>
    %381 = arith.addf %378, %380 : vector<8x128xf32>
    %cst_243 = arith.constant 0.606530666 : f32
    %382 = vector.broadcast %cst_243 : f32 to vector<8x128xf32>
    %383 = arith.mulf %382, %332 : vector<8x128xf32>
    %384 = arith.addf %383, %381 : vector<8x128xf32>
    %cst_244 = arith.constant 0.904837429 : f32
    %385 = vector.broadcast %cst_244 : f32 to vector<8x128xf32>
    %386 = arith.mulf %385, %346 : vector<8x128xf32>
    %cst_245 = arith.constant 1.000000e+00 : f32
    %cst_246 = arith.constant 0.904837429 : f32
    %387 = arith.subf %cst_245, %cst_246 : f32
    %388 = vector.broadcast %387 : f32 to vector<8x128xf32>
    %389 = arith.mulf %388, %384 : vector<8x128xf32>
    %390 = arith.addf %386, %389 : vector<8x128xf32>
    %cst_247 = arith.constant 1.000000e+00 : f32
    %391 = vector.broadcast %cst_247 : f32 to vector<8x128xf32>
    %392 = arith.cmpf ogt, %390, %391 : vector<8x128xf32>
    %cst_248 = arith.constant 1.000000e+00 : f32
    %cst_249 = arith.constant 0.000000e+00 : f32
    %393 = vector.broadcast %cst_248 : f32 to vector<8x128xf32>
    %394 = vector.broadcast %cst_249 : f32 to vector<8x128xf32>
    %395 = arith.select %392, %393, %394 : vector<8x128xi1>, vector<8x128xf32>
    %c0_250 = arith.constant 0 : index
    %c0_251 = arith.constant 0 : index
    %396 = vector.load %arg5[%c0_250, %c0_251] : memref<128x128xf32, #tpu.memory_space<vmem>>, vector<128x128xf32>
    %cst_252 = arith.constant dense<0.000000e+00> : vector<8x128xf32>
    %397 = tpu.matmul %395, %396, %cst_252 {dimension_numbers = #tpu.dot_dimension_numbers<[1], [0], [0], [1], [0, 0, 1, 1], [], []>} : vector<8x128xf32>, vector<128x128xf32>, vector<8x128xf32> -> vector<8x128xf32>
    %cst_253 = arith.constant 0.606530666 : f32
    %398 = vector.broadcast %cst_253 : f32 to vector<8x128xf32>
    %399 = arith.mulf %398, %351 : vector<8x128xf32>
    %400 = arith.addf %399, %397 : vector<8x128xf32>
    %cst_254 = arith.constant 0.904837429 : f32
    %401 = vector.broadcast %cst_254 : f32 to vector<8x128xf32>
    %402 = arith.mulf %401, %365 : vector<8x128xf32>
    %cst_255 = arith.constant 1.000000e+00 : f32
    %cst_256 = arith.constant 0.904837429 : f32
    %403 = arith.subf %cst_255, %cst_256 : f32
    %404 = vector.broadcast %403 : f32 to vector<8x128xf32>
    %405 = arith.mulf %404, %400 : vector<8x128xf32>
    %406 = arith.addf %402, %405 : vector<8x128xf32>
    %cst_257 = arith.constant 1.000000e+00 : f32
    %407 = vector.broadcast %cst_257 : f32 to vector<8x128xf32>
    %408 = arith.cmpf ogt, %406, %407 : vector<8x128xf32>
    %cst_258 = arith.constant 1.000000e+00 : f32
    %cst_259 = arith.constant 0.000000e+00 : f32
    %409 = vector.broadcast %cst_258 : f32 to vector<8x128xf32>
    %410 = vector.broadcast %cst_259 : f32 to vector<8x128xf32>
    %411 = arith.select %408, %409, %410 : vector<8x128xi1>, vector<8x128xf32>
    %c0_260 = arith.constant 0 : index
    %c0_261 = arith.constant 0 : index
    %412 = vector.load %arg6[%c0_260, %c0_261] : memref<128x128xf32, #tpu.memory_space<vmem>>, vector<128x128xf32>
    %cst_262 = arith.constant dense<0.000000e+00> : vector<8x128xf32>
    %413 = tpu.matmul %411, %412, %cst_262 {dimension_numbers = #tpu.dot_dimension_numbers<[1], [0], [0], [1], [0, 0, 1, 1], [], []>} : vector<8x128xf32>, vector<128x128xf32>, vector<8x128xf32> -> vector<8x128xf32>
    %cst_263 = arith.constant 0.606530666 : f32
    %414 = vector.broadcast %cst_263 : f32 to vector<8x128xf32>
    %415 = arith.mulf %414, %370 : vector<8x128xf32>
    %416 = arith.addf %415, %413 : vector<8x128xf32>
    %cst_264 = arith.constant 0.904837429 : f32
    %417 = vector.broadcast %cst_264 : f32 to vector<8x128xf32>
    %418 = arith.mulf %417, %376 : vector<8x128xf32>
    %cst_265 = arith.constant 1.000000e+00 : f32
    %cst_266 = arith.constant 0.904837429 : f32
    %419 = arith.subf %cst_265, %cst_266 : f32
    %420 = vector.broadcast %419 : f32 to vector<8x128xf32>
    %421 = arith.mulf %420, %416 : vector<8x128xf32>
    %422 = arith.addf %418, %421 : vector<8x128xf32>
    %c56_267 = arith.constant 56 : index
    %c0_268 = arith.constant 0 : index
    %423 = vector.load %arg7[%c56_267, %c0_268] : memref<64x128xf32, #tpu.memory_space<vmem>>, vector<8x128xf32>
    tpu.vector_store %arg7[%c56_267, %c0_268], %422 {strides = array<i32>} : memref<64x128xf32, #tpu.memory_space<vmem>>, vector<8x128xf32>,
    return
  }
  func.func @transform_0(%arg0: i32) -> (i32, i32) {
    %c0_i32 = arith.constant 0 : i32
    %c0_i32_0 = arith.constant 0 : i32
    %c0_i32_1 = arith.constant 0 : i32
    return %c0_i32, %c0_i32_0 : i32, i32
  }
  func.func @transform_1(%arg0: i32) -> (i32, i32) {
    %c0_i32 = arith.constant 0 : i32
    %c0_i32_0 = arith.constant 0 : i32
    %c0_i32_1 = arith.constant 0 : i32
    return %c0_i32, %c0_i32_0 : i32, i32
  }
  func.func @transform_2(%arg0: i32) -> (i32, i32) {
    %c0_i32 = arith.constant 0 : i32
    %c0_i32_0 = arith.constant 0 : i32
    %c0_i32_1 = arith.constant 0 : i32
    return %c0_i32, %c0_i32_0 : i32, i32
  }
  func.func @transform_3(%arg0: i32) -> (i32, i32) {
    %c0_i32 = arith.constant 0 : i32
    %c0_i32_0 = arith.constant 0 : i32
    %c0_i32_1 = arith.constant 0 : i32
    return %c0_i32, %c0_i32_0 : i32, i32
  }
  func.func @transform_4(%arg0: i32) -> (i32, i32) {
    %c0_i32 = arith.constant 0 : i32
    %c0_i32_0 = arith.constant 0 : i32
    %c0_i32_1 = arith.constant 0 : i32
    return %c0_i32, %c0_i32_0 : i32, i32
  }
  func.func @transform_5(%arg0: i32) -> (i32, i32) {
    %c0_i32 = arith.constant 0 : i32
    %c0_i32_0 = arith.constant 0 : i32
    %c0_i32_1 = arith.constant 0 : i32
    return %c0_i32, %c0_i32_0 : i32, i32
  }
  func.func @transform_6(%arg0: i32) -> (i32, i32) {
    %c0_i32 = arith.constant 0 : i32
    %c0_i32_0 = arith.constant 0 : i32
    %c0_i32_1 = arith.constant 0 : i32
    return %c0_i32, %c0_i32_0 : i32, i32
  }
}

</mosaic_0001>

<bundles_post_ra>
// kernel: tpu_custom_call.1
= control target key start
LH: loop header
LB: loop body
LE: loop exit
PB: predicated region body
PF: predicated region fallthrough
CT: control target
= control target key end

     0   :  { %11 = vsyncpa [#allocation4], 0  ;;  %s5319_s0 = inlined_call_operand.hbm [shape: f32[64,128], index: 0, kind: input, shape index: {}]   ;;  %s5320_s1 = inlined_call_operand.hbm [shape: f32[128,128], index: 1, kind: input, shape index: {}]   ;;  %s5321_s2 = inlined_call_operand.vmem [shape: f32[1,128], index: 2, kind: input, shape index: {}]   ;;  %s5322_s3 = inlined_call_operand.hbm [shape: f32[128,128], index: 3, kind: input, shape index: {}]   ;;  %s5323_s4 = inlined_call_operand.hbm [shape: f32[128,128], index: 4, kind: input, shape index: {}]   ;;  %s5324_s5 = inlined_call_operand.hbm [shape: f32[128,128], index: 5, kind: input, shape index: {}]   ;;  %s5325_s6 = inlined_call_operand.hbm [shape: f32[64,128], index: 6, kind: output, shape index: {}]  }
   0x1   :  { %12 = vsyncpa [#allocation7], 0 }
   0x2   :  { %13 = vsyncpa [#allocation10], 0 }
   0x3   :  { %14 = vsyncpa [#allocation5], 0  ;;  %s3995_s21 = smov [#allocation6]   ;;  %s3996_s23 = smov [#allocation9]  }
   0x4   :  { %s32_s22 = sshll.u32 %s3995_s21, 4  ;;  %s58_s24 = sshll.u32 %s3996_s23, 4  ;;  %s33_s22 = int_to_ptr.vmem [resolvable:$true] %s32_s22  ;;  %s59_s24 = int_to_ptr.vmem [resolvable:$true] %s58_s24 }
   0x5   :  { %s3875_s25 = scalar_lea.vmem %s33_s22, 2048  ;;  %p3880_p1 = scmp.lt.s32.totalorder %s33_s22, %s33_s22 }
   0x6   :  { %p3876_p0 = scmp.ne.s32.totalorder %s33_s22, %s3875_s25  ;;  %p3881_p2 = scmp.lt.s32.totalorder %s3875_s25, %s3875_s25 }
   0x8   :  { %p3882_p3 = por %p3881_p2, %p3880_p1 }
   0xa   :  { %p3883_p4 = pnand %p3882_p3, %p3876_p0 }
   0xc   :  { %3886 = shalt.err (!%p3883_p4)
}
   0xd   :  { %s3997_s26 = smov 128   ;;  %s3998_s27 = smov 8  }
   0xe   :  { %38 = dma.hbm_to_vmem [thread:$0]  %s5320_s1, 2048, %s33_s22, [#allocation7], %s3997_s26, %s3997_s26, %s3998_s27  }
   0xf   :  { %s3895_s30 = scalar_lea.vmem %s59_s24, 2048  ;;  %p3900_p6 = scmp.lt.s32.totalorder %s59_s24, %s59_s24 }
  0x10   :  { %p3896_p5 = scmp.ne.s32.totalorder %s59_s24, %s3895_s30  ;;  %p3901_p7 = scmp.lt.s32.totalorder %s3895_s30, %s3895_s30 }
  0x12   :  { %p3902_p8 = por %p3901_p7, %p3900_p6 }
  0x14   :  { %p3903_p9 = pnand %p3902_p8, %p3896_p5 }
  0x16   :  { %3906 = shalt.err (!%p3903_p9)
}
  0x17   :  { %64 = dma.hbm_to_vmem [thread:$0]  %s5323_s4, 2048, %s59_s24, [#allocation10], %s3997_s26, %s3997_s26, %s3998_s27  }
  0x18   :  { %s3999_s9 = smov [#allocation3]   ;;  %s4000_s11 = smov [#allocation8]  }
  0x19   :  { %s20_s10 = sshll.u32 %s3999_s9, 4  ;;  %s46_s12 = sshll.u32 %s4000_s11, 4  ;;  %s21_s10 = int_to_ptr.vmem [resolvable:$true] %s20_s10  ;;  %s47_s12 = int_to_ptr.vmem [resolvable:$true] %s46_s12 }
  0x1a   :  { %s3915_s1 = scalar_lea.vmem %s21_s10, 1024  ;;  %p3920_p11 = scmp.lt.s32.totalorder %s21_s10, %s21_s10 }
  0x1b   :  { %p3916_p10 = scmp.ne.s32.totalorder %s21_s10, %s3915_s1  ;;  %p3921_p12 = scmp.lt.s32.totalorder %s3915_s1, %s3915_s1 }
  0x1d   :  { %p3922_p13 = por %p3921_p12, %p3920_p11 }
  0x1f   :  { %p3923_p0 = pnand %p3922_p13, %p3916_p10 }
  0x21   :  { %3926 = shalt.err (!%p3923_p0)
}
  0x22   :  { %26 = dma.hbm_to_vmem [thread:$0]  %s5319_s0, 1024, %s21_s10, [#allocation4], %s3997_s26, %s3997_s26, %s3998_s27  }
  0x23   :  { %s3935_s4 = scalar_lea.vmem %s47_s12, 2048  ;;  %p3940_p2 = scmp.lt.s32.totalorder %s47_s12, %s47_s12 }
  0x24   :  { %p3936_p1 = scmp.ne.s32.totalorder %s47_s12, %s3935_s4  ;;  %p3941_p3 = scmp.lt.s32.totalorder %s3935_s4, %s3935_s4 }
  0x26   :  { %p3942_p4 = por %p3941_p3, %p3940_p2 }
  0x28   :  { %p3943_p5 = pnand %p3942_p4, %p3936_p1 }
  0x2a   :  { %3946 = shalt.err (!%p3943_p5)
}
  0x2b   :  { %52 = dma.hbm_to_vmem [thread:$0]  %s5322_s3, 2048, %s47_s12, [#allocation7], %s3997_s26, %s3997_s26, %s3998_s27  }
  0x2c   :  { %s4001_s17 = smov [#allocation11]  }
  0x2d   :  { %s70_s18 = sshll.u32 %s4001_s17, 4  ;;  %s71_s18 = int_to_ptr.vmem [resolvable:$true] %s70_s18 }
  0x2e   :  { %s3955_s19 = scalar_lea.vmem %s71_s18, 2048  ;;  %p3960_p7 = scmp.lt.s32.totalorder %s71_s18, %s71_s18 }
  0x2f   :  { %p3956_p6 = scmp.ne.s32.totalorder %s71_s18, %s3955_s19  ;;  %p3961_p8 = scmp.lt.s32.totalorder %s3955_s19, %s3955_s19 }
  0x31   :  { %p3962_p9 = por %p3961_p8, %p3960_p7 }
  0x33   :  { %p3963_p10 = pnand %p3962_p9, %p3956_p6 }
  0x35   :  { %3966 = shalt.err (!%p3963_p10)
}
  0x36   :  { %76 = dma.hbm_to_vmem [thread:$0]  %s5324_s5, 2048, %s71_s18, [#allocation10], %s3997_s26, %s3997_s26, %s3998_s27  }
  0x37   :  { %3987 = dma.done.wait [#allocation4], 1024  }
  0x38   :  { %3988 = vsyncadd [#allocation4], 4294966272 }
  0x39   :  { %3989 = dma.done.wait [#allocation7], 4096  }
  0x3a   :  { %3990 = vsyncadd [#allocation7], 4294963200 }
  0x3b   :  { %3991 = dma.done.wait [#allocation10], 4096  }
  0x3c   :  { %3992 = vsyncadd [#allocation10], 4294963200  ;;  %v5330_v0 = vmov 0.0   ;;  %vm4003_vm0 = vmmov 0   ;;  %v115_v1 = vld [vmem:[#allocation6 + $0x78] sm:$0xff]  ;;  %v114_v2 = vld [vmem:[#allocation6 + $0x70] sm:$0xff] }
  0x3d   :  { %3015 = vmatprep.subr.mxu1 %v5330_v0  ;;  %3047 = vmatprep.mubr.msk.f32.mxu1 %vm4003_vm0, %v5330_v0  ;;  %v4074_v3 = vld [vmem:[#allocation8 + $0x78] sm:$0xff]  ;;  %v4077_v4 = vld [vmem:[#allocation8 + $0x70] sm:$0xff]  ;;  %v113_v5 = vld [vmem:[#allocation6 + $0x68] sm:$0xff] }
  0x3e   :  { %2971 = vmatprep.subr.mxu0 %v115_v1  ;;  %3016 = vmatpush3.msra.mxu1 %v4074_v3  ;;  %v4080_v6 = vld [vmem:[#allocation8 + $0x68] sm:$0xff]  ;;  %v112_v7 = vld [vmem:[#allocation6 + $0x60] sm:$0xff]  ;;  %v111_v9 = vld [vmem:[#allocation6 + $0x58] sm:$0xff] }
  0x3f   :  { %2972 = vmatpush3.msra.mxu0 %v115_v1  ;;  %3017 = vmatprep.subr.mxu1 %v5330_v0  ;;  %v4084_v8 = vld [vmem:[#allocation8 + $0x60] sm:$0xff]  ;;  %v4088_v10 = vld [vmem:[#allocation8 + $0x58] sm:$0xff]  ;;  %v110_v11 = vld [vmem:[#allocation6 + $0x50] sm:$0xff] }
  0x40   :  { %2973 = vmatprep.subr.mxu0 %v114_v2  ;;  %3018 = vmatpush3.msra.mxu1 %v4077_v4  ;;  %v4092_v12 = vld [vmem:[#allocation8 + $0x50] sm:$0xff]  ;;  %v109_v13 = vld [vmem:[#allocation6 + $0x48] sm:$0xff]  ;;  %v108_v15 = vld [vmem:[#allocation6 + $0x40] sm:$0xff] }
  0x41   :  { %2974 = vmatpush3.msra.mxu0 %v114_v2  ;;  %3019 = vmatprep.subr.mxu1 %v5330_v0  ;;  %v4096_v14 = vld [vmem:[#allocation8 + $0x48] sm:$0xff]  ;;  %v4100_v16 = vld [vmem:[#allocation8 + $0x40] sm:$0xff]  ;;  %v107_v17 = vld [vmem:[#allocation6 + $0x38] sm:$0xff] }
  0x42   :  { %2975 = vmatprep.subr.mxu0 %v113_v5  ;;  %3020 = vmatpush3.msra.mxu1 %v4080_v6  ;;  %v4104_v18 = vld [vmem:[#allocation8 + $0x38] sm:$0xff]  ;;  %v106_v19 = vld [vmem:[#allocation6 + $0x30] sm:$0xff]  ;;  %v105_v21 = vld [vmem:[#allocation6 + $0x28] sm:$0xff] }
  0x43   :  { %2976 = vmatpush3.msra.mxu0 %v113_v5  ;;  %3021 = vmatprep.subr.mxu1 %v5330_v0  ;;  %v4108_v20 = vld [vmem:[#allocation8 + $0x30] sm:$0xff]  ;;  %v4112_v22 = vld [vmem:[#allocation8 + $0x28] sm:$0xff]  ;;  %v104_v23 = vld [vmem:[#allocation6 + $0x20] sm:$0xff] }
  0x44   :  { %2977 = vmatprep.subr.mxu0 %v112_v7  ;;  %3022 = vmatpush3.msra.mxu1 %v4084_v8  ;;  %v4116_v24 = vld [vmem:[#allocation8 + $0x20] sm:$0xff]  ;;  %v103_v25 = vld [vmem:[#allocation6 + $0x18] sm:$0xff]  ;;  %v102_v27 = vld [vmem:[#allocation6 + $0x10] sm:$0xff] }
  0x45   :  { %2978 = vmatpush3.msra.mxu0 %v112_v7  ;;  %3023 = vmatprep.subr.mxu1 %v5330_v0  ;;  %v4120_v26 = vld [vmem:[#allocation8 + $0x18] sm:$0xff]  ;;  %v4124_v28 = vld [vmem:[#allocation8 + $0x10] sm:$0xff]  ;;  %v101_v29 = vld [vmem:[#allocation6 + $0x8] sm:$0xff] }
  0x46   :  { %2979 = vmatprep.subr.mxu0 %v111_v9  ;;  %3024 = vmatpush3.msra.mxu1 %v4088_v10  ;;  %v92_v30 = vld [vmem:[#allocation3] sm:$0xff]  ;;  %v4129_v31 = vld [vmem:[#allocation8 + $0x8] sm:$0xff]  ;;  %v94_v35 = vld [vmem:[#allocation3 + $0x10] sm:$0xff] }
  0x47   :  { %2980 = vmatpush3.msra.mxu0 %v111_v9  ;;  %3025 = vmatprep.subr.mxu1 %v5330_v0  ;;  %v100_v32 = vld [vmem:[#allocation6] sm:$0xff]  ;;  %v93_v34 = vld [vmem:[#allocation3 + $0x8] sm:$0xff]  ;;  %v4137_v36 = vld [vmem:[#allocation9 + $0x78] sm:$0xff] }
  0x48   :  { %2981 = vmatprep.subr.mxu0 %v110_v11  ;;  %3026 = vmatpush3.msra.mxu1 %v4092_v12  ;;  %v4132_v33 = vld [vmem:[#allocation8] sm:$0xff]  ;;  %v4141_v37 = vld [vmem:[#allocation9 + $0x70] sm:$0xff]  ;;  %v95_v38 = vld [vmem:[#allocation3 + $0x18] sm:$0xff] }
  0x49   :  { %2982 = vmatpush3.msra.mxu0 %v110_v11  ;;  %3027 = vmatprep.subr.mxu1 %v5330_v0  ;;  %v4146_v39 = vld [vmem:[#allocation9 + $0x68] sm:$0xff]  ;;  %v96_v40 = vld [vmem:[#allocation3 + $0x20] sm:$0xff]  ;;  %v4156_v42 = vld [vmem:[#allocation9 + $0x58] sm:$0xff] }
  0x4a   :  { %2983 = vmatprep.subr.mxu0 %v109_v13  ;;  %3028 = vmatpush3.msra.mxu1 %v4096_v14  ;;  %v4152_v41 = vld [vmem:[#allocation9 + $0x60] sm:$0xff]  ;;  %v4160_v43 = vld [vmem:[#allocation9 + $0x50] sm:$0xff]  ;;  %v4164_v44 = vld [vmem:[#allocation9 + $0x48] sm:$0xff] }
  0x4b   :  { %2984 = vmatpush3.msra.mxu0 %v109_v13  ;;  %3029 = vmatprep.subr.mxu1 %v5330_v0  ;;  %v4168_v45 = vld [vmem:[#allocation9 + $0x40] sm:$0xff]  ;;  %v4172_v46 = vld [vmem:[#allocation9 + $0x38] sm:$0xff]  ;;  %v4176_v47 = vld [vmem:[#allocation9 + $0x30] sm:$0xff] }
  0x4c   :  { %2985 = vmatprep.subr.mxu0 %v108_v15  ;;  %3030 = vmatpush3.msra.mxu1 %v4100_v16  ;;  %v4180_v48 = vld [vmem:[#allocation9 + $0x28] sm:$0xff]  ;;  %v4186_v50 = vld [vmem:[#allocation9 + $0x20] sm:$0xff]  ;;  %v4189_v51 = vld [vmem:[#allocation9 + $0x18] sm:$0xff] }
  0x4d   :  { %2986 = vmatpush3.msra.mxu0 %v108_v15  ;;  %3031 = vmatprep.subr.mxu1 %v5330_v0  ;;  %v97_v49 = vld [vmem:[#allocation3 + $0x28] sm:$0xff]  ;;  %v98_v52 = vld [vmem:[#allocation3 + $0x30] sm:$0xff]  ;;  %v99_v53 = vld [vmem:[#allocation3 + $0x38] sm:$0xff] }
  0x4e   :  { %2987 = vmatprep.subr.mxu0 %v107_v17  ;;  %3032 = vmatpush3.msra.mxu1 %v4104_v18  ;;  %v4193_v54 = vld [vmem:[#allocation9 + $0x10] sm:$0xff]  ;;  %v4197_v55 = vld [vmem:[#allocation9 + $0x8] sm:$0xff]  ;;  %v4203_v56 = vld [vmem:[#allocation9] sm:$0xff] }
  0x4f   :  { %2988 = vmatpush3.msra.mxu0 %v107_v17  ;;  %3033 = vmatprep.subr.mxu1 %v5330_v0  ;;  %v4208_v57 = vld [vmem:[#allocation11 + $0x78] sm:$0xff]  ;;  %v4210_v58 = vld [vmem:[#allocation11 + $0x70] sm:$0xff]  ;;  %v4214_v59 = vld [vmem:[#allocation11 + $0x68] sm:$0xff] }
  0x50   :  { %2989 = vmatprep.subr.mxu0 %v106_v19  ;;  %3034 = vmatpush3.msra.mxu1 %v4108_v20  ;;  %v4218_v60 = vld [vmem:[#allocation11 + $0x60] sm:$0xff]  ;;  %v4222_v61 = vld [vmem:[#allocation11 + $0x58] sm:$0xff]  ;;  %v4226_v62 = vld [vmem:[#allocation11 + $0x50] sm:$0xff] }
  0x51   :  { %2990 = vmatpush3.msra.mxu0 %v106_v19  ;;  %3035 = vmatprep.subr.mxu1 %v5330_v0  ;;  %v4230_v63 = vld [vmem:[#allocation11 + $0x48] sm:$0xff]  ;;  %v4234_v1 = vld [vmem:[#allocation11 + $0x40] sm:$0xff]  ;;  %v4238_v2 = vld [vmem:[#allocation11 + $0x38] sm:$0xff] }
  0x52   :  { %2991 = vmatprep.subr.mxu0 %v105_v21  ;;  %3036 = vmatpush3.msra.mxu1 %v4112_v22  ;;  %v4244_v5 = vld [vmem:[#allocation11 + $0x30] sm:$0xff]  ;;  %v4248_v7 = vld [vmem:[#allocation11 + $0x28] sm:$0xff]  ;;  %v4252_v9 = vld [vmem:[#allocation11 + $0x20] sm:$0xff] }
  0x53   :  { %2992 = vmatpush3.msra.mxu0 %v105_v21  ;;  %3037 = vmatprep.subr.mxu1 %v5330_v0  ;;  %v4256_v11 = vld [vmem:[#allocation11 + $0x18] sm:$0xff]  ;;  %v4258_v13 = vld [vmem:[#allocation11 + $0x10] sm:$0xff]  ;;  %v4269_v19 = vld [vmem:[%s5321_s2] ss:$0 sm:$0xff] }
  0x54   :  { %2993 = vmatprep.subr.mxu0 %v104_v23  ;;  %3038 = vmatpush3.msra.mxu1 %v4116_v24 }
  0x55   :  { %2994 = vmatpush3.msra.mxu0 %v104_v23  ;;  %3039 = vmatprep.subr.mxu1 %v5330_v0 }
  0x56   :  { %2995 = vmatprep.subr.mxu0 %v103_v25  ;;  %3040 = vmatpush3.msra.mxu1 %v4120_v26 }
  0x57   :  { %2996 = vmatpush3.msra.mxu0 %v103_v25  ;;  %3041 = vmatprep.subr.mxu1 %v5330_v0 }
  0x58   :  { %2997 = vmatprep.subr.mxu0 %v102_v27  ;;  %3042 = vmatpush3.msra.mxu1 %v4124_v28 }
  0x59   :  { %2998 = vmatpush3.msra.mxu0 %v102_v27  ;;  %3043 = vmatprep.subr.mxu1 %v5330_v0 }
  0x5a   :  { %2999 = vmatprep.subr.mxu0 %v101_v29  ;;  %3003 = vmatprep.mubr.f32.mxu0 %v92_v30 }
  0x5b   :  { %3000 = vmatpush3.msra.mxu0 %v101_v29  ;;  %3044 = vmatpush3.msra.mxu1 %v4129_v31 }
  0x5c   :  { %3001 = vmatprep.subr.mxu0 %v100_v32  ;;  %3045 = vmatprep.subr.mxu1 %v5330_v0 }
  0x5d   :  { %3002 = vmatpush3.msra.mxu0 %v100_v32  ;;  %3046 = vmatpush3.msra.mxu1 %v4132_v33  ;;  %v5326_v32 = vmov 1.0  }
  0x5e   :  { %3004 = vmatmul.mubr.f32.vlgmr.msra.gmra.mxu0 %v93_v34  ;;  %3048 = vmatmul.mubr.f32.vlgmr.msra.gmra.mxu1 %v5330_v0 }
  0x5f   :  { %3050 = vmatprep.subr.mxu0 %v5330_v0  ;;  %3006 = vmatprep.mubr.f32.mxu0 %v94_v35 }
  0x60   :  { %3051 = vmatpush3.msra.mxu0 %v4137_v36  ;;  %3085 = vmatprep.subr.mxu1 %v5330_v0 }
  0x61   :  { %3052 = vmatprep.subr.mxu0 %v5330_v0  ;;  %3117 = vmatprep.mubr.msk.f32.mxu1 %vm4003_vm0, %v5330_v0 }
  0x62   :  { %3053 = vmatpush3.msra.mxu0 %v4141_v37  ;;  %3086 = vmatpush3.msra.mxu1 %v4208_v57 }
  0x63   :  { %3054 = vmatprep.subr.mxu0 %v5330_v0  ;;  %3007 = vmatmul.mubr.f32.gmra.mxu0 %v95_v38  ;;  %v4347_v38 = vld [vmem:[#allocation11 + $0x8] sm:$0xff] }
  0x64   :  { %3055 = vmatpush3.msra.mxu0 %v4146_v39  ;;  %3009 = vmatprep.mubr.f32.mxu0 %v96_v40  ;;  %v4352_v40 = vld [vmem:[#allocation11] sm:$0xff] }
  0x65   :  { %3056 = vmatprep.subr.mxu0 %v5330_v0  ;;  %3087 = vmatprep.subr.mxu1 %v5330_v0 }
  0x66   :  { %3057 = vmatpush3.msra.mxu0 %v4152_v41  ;;  %3088 = vmatpush3.msra.mxu1 %v4210_v58 }
  0x67   :  { %3058 = vmatprep.subr.mxu0 %v5330_v0  ;;  %3010 = vmatmul.mubr.f32.gmra.mxu0 %v97_v49 }
  0x68   :  { %3059 = vmatpush3.msra.mxu0 %v4156_v42  ;;  %3012 = vmatprep.mubr.f32.mxu0 %v98_v52 }
  0x69   :  { %3060 = vmatprep.subr.mxu0 %v5330_v0  ;;  %3089 = vmatprep.subr.mxu1 %v5330_v0 }
  0x6a   :  { %3061 = vmatpush3.msra.mxu0 %v4160_v43  ;;  %3090 = vmatpush3.msra.mxu1 %v4214_v59 }
  0x6b   :  { %3062 = vmatprep.subr.mxu0 %v5330_v0  ;;  %3013 = vmatmul.mubr.f32.gmra.mxu0 %v99_v53 }
  0x6c   :  { %3063 = vmatpush3.msra.mxu0 %v4164_v44  ;;  %3082 = vmatprep.mubr.msk.f32.mxu0 %vm4003_vm0, %v5330_v0 }
  0x6d   :  { %3064 = vmatprep.subr.mxu0 %v5330_v0  ;;  %3091 = vmatprep.subr.mxu1 %v5330_v0 }
  0x6e   :  { %3065 = vmatpush3.msra.mxu0 %v4168_v45  ;;  %3092 = vmatpush3.msra.mxu1 %v4218_v60 }
  0x6f   :  { %3066 = vmatprep.subr.mxu0 %v5330_v0  ;;  %3093 = vmatprep.subr.mxu1 %v5330_v0 }
  0x70   :  { %3067 = vmatpush3.msra.mxu0 %v4172_v46  ;;  %3094 = vmatpush3.msra.mxu1 %v4222_v61 }
  0x71   :  { %3068 = vmatprep.subr.mxu0 %v5330_v0  ;;  %3095 = vmatprep.subr.mxu1 %v5330_v0 }
  0x72   :  { %3069 = vmatpush3.msra.mxu0 %v4176_v47  ;;  %3096 = vmatpush3.msra.mxu1 %v4226_v62 }
  0x73   :  { %3070 = vmatprep.subr.mxu0 %v5330_v0  ;;  %3097 = vmatprep.subr.mxu1 %v5330_v0 }
  0x74   :  { %3071 = vmatpush3.msra.mxu0 %v4180_v48  ;;  %3098 = vmatpush3.msra.mxu1 %v4230_v63 }
  0x75   :  { %3072 = vmatprep.subr.mxu0 %v5330_v0  ;;  %3099 = vmatprep.subr.mxu1 %v5330_v0 }
  0x76   :  { %3073 = vmatpush3.msra.mxu0 %v4186_v50  ;;  %3100 = vmatpush3.msra.mxu1 %v4234_v1 }
  0x77   :  { %3074 = vmatprep.subr.mxu0 %v5330_v0  ;;  %3101 = vmatprep.subr.mxu1 %v5330_v0 }
  0x78   :  { %3075 = vmatpush3.msra.mxu0 %v4189_v51  ;;  %3102 = vmatpush3.msra.mxu1 %v4238_v2 }
  0x79   :  { %3076 = vmatprep.subr.mxu0 %v5330_v0  ;;  %3103 = vmatprep.subr.mxu1 %v5330_v0 }
  0x7a   :  { %3077 = vmatpush3.msra.mxu0 %v4193_v54  ;;  %3104 = vmatpush3.msra.mxu1 %v4244_v5 }
  0x7b   :  { %3078 = vmatprep.subr.mxu0 %v5330_v0  ;;  %3105 = vmatprep.subr.mxu1 %v5330_v0 }
  0x7c   :  { %3079 = vmatpush3.msra.mxu0 %v4197_v55  ;;  %3106 = vmatpush3.msra.mxu1 %v4248_v7 }
  0x7d   :  { %3080 = vmatprep.subr.mxu0 %v5330_v0  ;;  %3107 = vmatprep.subr.mxu1 %v5330_v0 }
  0x7e   :  { %3081 = vmatpush3.msra.mxu0 %v4203_v56  ;;  %3108 = vmatpush3.msra.mxu1 %v4252_v9 }
  0x7f   :  { %3120 = vmatprep.subr.mxu0 %v5330_v0  ;;  %3109 = vmatprep.subr.mxu1 %v5330_v0 }
  0x80   :  { %3110 = vmatpush3.msra.mxu1 %v4256_v11 }
  0x81   :  { %3111 = vmatprep.subr.mxu1 %v5330_v0 }
  0x82   :  { %3112 = vmatpush3.msra.mxu1 %v4258_v13 }
  0x83   :  { %3113 = vmatprep.subr.mxu1 %v5330_v0 }
  0x84   :  { %3114 = vmatpush3.msra.mxu1 %v4347_v38 }
  0x85   :  { %3115 = vmatprep.subr.mxu1 %v5330_v0 }
  0x86   :  { %3116 = vmatpush3.msra.mxu1 %v4352_v40 }
  0x87   :  { %3155 = vmatprep.subr.mxu1 %v5330_v0 }
 0x11e   :  { %v4264_v15 = vpop.f32.mrf.mxu0  ;;  %v319_v17 = vpop.f32.mrf.mxu1 }
 0x120   :  { %v189_v21 = vpop.f32.mrf.mxu0  ;;  %v3049_v23 = vpop.f32.mrf.mxu1 }
 0x121   :  { %v190_v25 = vadd.f32 %v4269_v19, %v189_v21 }
 0x123   :  { %v4272_v27 = vadd.f32 %v319_v17, %v190_v25  ;;  %v4359_v49 = vpop.f32.mrf.mxu0 }
 0x124   :  { %5332 = vst [vmem:[#allocation17_spill] sm:$0xff] %v4359_v49 }
 0x125   :  { %v325_v29 = vmul.f32 0.09516257, %v4272_v27  ;;  %v4361_v52 = vpop.f32.mrf.mxu0 }
 0x127   :  { %vm327_vm1 = vcmp.gt.f32.partialorder %v325_v29, 1.0  ;;  %v4363_v53 = vpop.f32.mrf.mxu0 }
 0x128   :  { %v328_v30 = vsel %vm327_vm1, 1.0, %v5330_v0  ;;  %3083 = vmatmul.mubr.msk.f32.vlgmr.msra.gmra.mxu0 %vm327_vm1, %v5326_v32  ;;  %5333 = vst [vmem:[#allocation18_spill] sm:$0xff] %v4363_v53 }
 0x129   :  { %v329_v34 = vsub.f32 1.0, %v328_v30  ;;  %3121 = vmatpush3.msra.mxu0 %v4074_v3  ;;  %3152 = vmatprep.mubr.msk.f32.mxu0 %vm4003_vm0, %v5330_v0  ;;  %v4365_v17 = vpop.f32.mrf.mxu0 }
 0x12a   :  { %3122 = vmatprep.subr.mxu0 %v5330_v0  ;;  %5334 = vst [vmem:[#allocation19_spill] sm:$0xff] %v4365_v17 }
 0x12b   :  { %v4283_v35 = vmul.f32 %v329_v34, %v325_v29  ;;  %3123 = vmatpush3.msra.mxu0 %v4077_v4  ;;  %v4367_v21 = vpop.f32.mrf.mxu0 }
 0x12c   :  { %3124 = vmatprep.subr.mxu0 %v5330_v0  ;;  %5335 = vst [vmem:[#allocation20_spill] sm:$0xff] %v4367_v21 }
 0x12d   :  { %3125 = vmatpush3.msra.mxu0 %v4080_v6  ;;  %v4369_v23 = vpop.f32.mrf.mxu0 }
 0x12e   :  { %3126 = vmatprep.subr.mxu0 %v5330_v0  ;;  %5336 = vst [vmem:[#allocation21_spill] sm:$0xff] %v4369_v23 }
 0x12f   :  { %3127 = vmatpush3.msra.mxu0 %v4084_v8 }
 0x130   :  { %3128 = vmatprep.subr.mxu0 %v5330_v0 }
 0x131   :  { %3129 = vmatpush3.msra.mxu0 %v4088_v10 }
 0x132   :  { %3130 = vmatprep.subr.mxu0 %v5330_v0 }
 0x133   :  { %3131 = vmatpush3.msra.mxu0 %v4092_v12 }
 0x134   :  { %3132 = vmatprep.subr.mxu0 %v5330_v0 }
 0x135   :  { %3133 = vmatpush3.msra.mxu0 %v4096_v14 }
 0x136   :  { %3134 = vmatprep.subr.mxu0 %v5330_v0 }
 0x137   :  { %3135 = vmatpush3.msra.mxu0 %v4100_v16 }
 0x138   :  { %3136 = vmatprep.subr.mxu0 %v5330_v0 }
 0x139   :  { %3137 = vmatpush3.msra.mxu0 %v4104_v18 }
 0x13a   :  { %3138 = vmatprep.subr.mxu0 %v5330_v0 }
 0x13b   :  { %3139 = vmatpush3.msra.mxu0 %v4108_v20 }
 0x13c   :  { %3140 = vmatprep.subr.mxu0 %v5330_v0 }
 0x13d   :  { %3141 = vmatpush3.msra.mxu0 %v4112_v22 }
 0x13e   :  { %3142 = vmatprep.subr.mxu0 %v5330_v0 }
 0x13f   :  { %3143 = vmatpush3.msra.mxu0 %v4116_v24 }
 0x140   :  { %3144 = vmatprep.subr.mxu0 %v5330_v0 }
 0x141   :  { %3145 = vmatpush3.msra.mxu0 %v4120_v26 }
 0x142   :  { %3146 = vmatprep.subr.mxu0 %v5330_v0 }
 0x143   :  { %3147 = vmatpush3.msra.mxu0 %v4124_v28 }
 0x144   :  { %3148 = vmatprep.subr.mxu0 %v5330_v0 }
 0x145   :  { %3149 = vmatpush3.msra.mxu0 %v4129_v31 }
 0x146   :  { %3150 = vmatprep.subr.mxu0 %v5330_v0 }
 0x147   :  { %3151 = vmatpush3.msra.mxu0 %v4132_v33 }
 0x148   :  { %3153 = vmatmul.mubr.msk.f32.vlgmr.msra.gmra.mxu0 %vm327_vm1, %v5326_v32  ;;  %3190 = vmatprep.subr.mxu0 %v5330_v0 }
 0x149   :  { %3191 = vmatpush3.msra.mxu0 %v4208_v57  ;;  %3222 = vmatprep.mubr.msk.f32.mxu0 %vm4003_vm0, %v5330_v0 }
 0x14a   :  { %3192 = vmatprep.subr.mxu0 %v5330_v0 }
 0x14b   :  { %3193 = vmatpush3.msra.mxu0 %v4210_v58 }
 0x14c   :  { %3194 = vmatprep.subr.mxu0 %v5330_v0 }
 0x14d   :  { %3195 = vmatpush3.msra.mxu0 %v4214_v59 }
 0x14e   :  { %3196 = vmatprep.subr.mxu0 %v5330_v0 }
 0x14f   :  { %3197 = vmatpush3.msra.mxu0 %v4218_v60 }
 0x150   :  { %3198 = vmatprep.subr.mxu0 %v5330_v0 }
 0x151   :  { %3199 = vmatpush3.msra.mxu0 %v4222_v61 }
 0x152   :  { %3200 = vmatprep.subr.mxu0 %v5330_v0 }
 0x153   :  { %3201 = vmatpush3.msra.mxu0 %v4226_v62 }
 0x154   :  { %3202 = vmatprep.subr.mxu0 %v5330_v0 }
 0x155   :  { %3203 = vmatpush3.msra.mxu0 %v4230_v63 }
 0x156   :  { %3204 = vmatprep.subr.mxu0 %v5330_v0 }
 0x157   :  { %3205 = vmatpush3.msra.mxu0 %v4234_v1 }
 0x158   :  { %3206 = vmatprep.subr.mxu0 %v5330_v0 }
 0x159   :  { %3207 = vmatpush3.msra.mxu0 %v4238_v2 }
 0x15a   :  { %3208 = vmatprep.subr.mxu0 %v5330_v0 }
 0x15b   :  { %3209 = vmatpush3.msra.mxu0 %v4244_v5 }
 0x15c   :  { %3210 = vmatprep.subr.mxu0 %v5330_v0 }
 0x15d   :  { %3211 = vmatpush3.msra.mxu0 %v4248_v7 }
 0x15e   :  { %3212 = vmatprep.subr.mxu0 %v5330_v0 }
 0x15f   :  { %3213 = vmatpush3.msra.mxu0 %v4252_v9 }
 0x160   :  { %3214 = vmatprep.subr.mxu0 %v5330_v0 }
 0x161   :  { %3215 = vmatpush3.msra.mxu0 %v4256_v11 }
 0x162   :  { %3216 = vmatprep.subr.mxu0 %v5330_v0 }
 0x163   :  { %3217 = vmatpush3.msra.mxu0 %v4258_v13 }
 0x164   :  { %3218 = vmatprep.subr.mxu0 %v5330_v0 }
 0x165   :  { %3219 = vmatpush3.msra.mxu0 %v4347_v38 }
 0x166   :  { %3220 = vmatprep.subr.mxu0 %v5330_v0 }
 0x167   :  { %3221 = vmatpush3.msra.mxu0 %v4352_v40 }
 0x168   :  { %3260 = vmatprep.subr.mxu0 %v5330_v0 }
 0x1e8   :  { %v4371_v25 = vpop.f32.mrf.mxu0 }
 0x1e9   :  { %v417_v29 = vmul.f32 0.09516257, %v4371_v25 }
 0x1ea   :  { %v3084_v30 = vpop.f32.mrf.mxu0 }
 0x1eb   :  { %vm419_vm2 = vcmp.gt.f32.partialorder %v417_v29, 1.0  ;;  %v600_v30 = vmul.f32 0.60653067, %v4272_v27 }
 0x1ec   :  { %v420_v34 = vsel %vm419_vm2, 1.0, %v5330_v0  ;;  %3118 = vmatmul.mubr.msk.f32.vlgmr.msra.gmra.mxu1 %vm419_vm2, %v5326_v32 }
 0x1ed   :  { %v421_v49 = vsub.f32 1.0, %v420_v34  ;;  %3156 = vmatpush3.msra.mxu1 %v4137_v36  ;;  %3187 = vmatprep.mubr.msk.f32.mxu1 %vm4003_vm0, %v5330_v0 }
 0x1ee   :  { %3157 = vmatprep.subr.mxu1 %v5330_v0 }
 0x1ef   :  { %v4380_v21 = vmul.f32 %v421_v49, %v417_v29  ;;  %3158 = vmatpush3.msra.mxu1 %v4141_v37  ;;  %v195_v49 = vadd.f32 %v4264_v15, %v4269_v19  ;;  %v602_v15 = vmul.f32 0.9048374, %v4283_v35 }
 0x1f0   :  { %3159 = vmatprep.subr.mxu1 %v5330_v0 }
 0x1f1   :  { %3160 = vmatpush3.msra.mxu1 %v4146_v39 }
 0x1f2   :  { %3161 = vmatprep.subr.mxu1 %v5330_v0 }
 0x1f3   :  { %3162 = vmatpush3.msra.mxu1 %v4152_v41 }
 0x1f4   :  { %3163 = vmatprep.subr.mxu1 %v5330_v0 }
 0x1f5   :  { %3164 = vmatpush3.msra.mxu1 %v4156_v42 }
 0x1f6   :  { %3165 = vmatprep.subr.mxu1 %v5330_v0 }
 0x1f7   :  { %3166 = vmatpush3.msra.mxu1 %v4160_v43 }
 0x1f8   :  { %3167 = vmatprep.subr.mxu1 %v5330_v0 }
 0x1f9   :  { %3168 = vmatpush3.msra.mxu1 %v4164_v44 }
 0x1fa   :  { %3169 = vmatprep.subr.mxu1 %v5330_v0 }
 0x1fb   :  { %3170 = vmatpush3.msra.mxu1 %v4168_v45 }
 0x1fc   :  { %3171 = vmatprep.subr.mxu1 %v5330_v0 }
 0x1fd   :  { %3172 = vmatpush3.msra.mxu1 %v4172_v46 }
 0x1fe   :  { %3173 = vmatprep.subr.mxu1 %v5330_v0 }
 0x1ff   :  { %3174 = vmatpush3.msra.mxu1 %v4176_v47 }
 0x200   :  { %3175 = vmatprep.subr.mxu1 %v5330_v0 }
 0x201   :  { %3176 = vmatpush3.msra.mxu1 %v4180_v48 }
 0x202   :  { %3177 = vmatprep.subr.mxu1 %v5330_v0 }
 0x203   :  { %3178 = vmatpush3.msra.mxu1 %v4186_v50 }
 0x204   :  { %3179 = vmatprep.subr.mxu1 %v5330_v0 }
 0x205   :  { %3180 = vmatpush3.msra.mxu1 %v4189_v51 }
 0x206   :  { %3181 = vmatprep.subr.mxu1 %v5330_v0 }
 0x207   :  { %3182 = vmatpush3.msra.mxu1 %v4193_v54 }
 0x208   :  { %v595_v29 = vpop.f32.mrf.mxu0  ;;  %3183 = vmatprep.subr.mxu1 %v5330_v0 }
 0x209   :  { %v599_v34 = vadd.f32 %v595_v29, %v195_v49  ;;  %3184 = vmatpush3.msra.mxu1 %v4197_v55  ;;  %v5337_v49 = vmov 1.0   ;;  %v4646_v29 = vld [vmem:[#allocation9 + $0x50] sm:$0xff] }
 0x20a   :  { %v3154_v32 = vpop.f32.mrf.mxu0  ;;  %3185 = vmatprep.subr.mxu1 %v5330_v0 }
 0x20b   :  { %v4413_v23 = vadd.f32 %v600_v30, %v599_v34  ;;  %3186 = vmatpush3.msra.mxu1 %v4203_v56  ;;  %v4650_v30 = vld [vmem:[#allocation9 + $0x48] sm:$0xff]  ;;  %v4654_v34 = vld [vmem:[#allocation9 + $0x40] sm:$0xff] }
 0x20c   :  { %3225 = vmatprep.subr.mxu1 %v5330_v0 }
 0x20d   :  { %v603_v53 = vmul.f32 0.09516257, %v4413_v23 }
 0x20f   :  { %v604_v17 = vadd.f32 %v603_v53, %v602_v15  ;;  %v4658_v15 = vld [vmem:[#allocation9 + $0x38] sm:$0xff] }
 0x211   :  { %vm605_vm3 = vcmp.gt.f32.partialorder %v604_v17, 1.0 }
 0x212   :  { %v606_v27 = vsel %vm605_vm3, 1.0, %v5330_v0  ;;  %3188 = vmatmul.mubr.msk.f32.vlgmr.msra.gmra.mxu1 %vm605_vm3, %v5337_v49 }
 0x213   :  { %v607_v32 = vsub.f32 1.0, %v606_v27  ;;  %3226 = vmatpush3.msra.mxu1 %v4074_v3  ;;  %3257 = vmatprep.mubr.msk.f32.mxu1 %vm4003_vm0, %v5330_v0  ;;  %v4662_v27 = vld [vmem:[#allocation9 + $0x30] sm:$0xff] }
 0x214   :  { %3227 = vmatprep.subr.mxu1 %v5330_v0 }
 0x215   :  { %3228 = vmatpush3.msra.mxu1 %v4077_v4  ;;  %v4428_v35 = vmul.f32 %v607_v32, %v604_v17  ;;  %v4632_v17 = vld [vmem:[#allocation9 + $0x68] sm:$0xff] }
 0x216   :  { %3229 = vmatprep.subr.mxu1 %v5330_v0  ;;  %v4666_v32 = vld [vmem:[#allocation9 + $0x28] sm:$0xff] }
 0x217   :  { %3230 = vmatpush3.msra.mxu1 %v4080_v6 }
 0x218   :  { %3231 = vmatprep.subr.mxu1 %v5330_v0 }
 0x219   :  { %3232 = vmatpush3.msra.mxu1 %v4084_v8  ;;  %v695_v8 = vmul.f32 0.60653067, %v4371_v25  ;;  %v4642_v25 = vld [vmem:[#allocation9 + $0x58] sm:$0xff] }
 0x21a   :  { %3233 = vmatprep.subr.mxu1 %v5330_v0 }
 0x21b   :  { %3234 = vmatpush3.msra.mxu1 %v4088_v10 }
 0x21c   :  { %3235 = vmatprep.subr.mxu1 %v5330_v0 }
 0x21d   :  { %3236 = vmatpush3.msra.mxu1 %v4092_v12 }
 0x21e   :  { %3237 = vmatprep.subr.mxu1 %v5330_v0 }
 0x21f   :  { %3238 = vmatpush3.msra.mxu1 %v4096_v14 }
 0x220   :  { %3239 = vmatprep.subr.mxu1 %v5330_v0 }
 0x221   :  { %3240 = vmatpush3.msra.mxu1 %v4100_v16 }
 0x222   :  { %3241 = vmatprep.subr.mxu1 %v5330_v0 }
 0x223   :  { %3242 = vmatpush3.msra.mxu1 %v4104_v18 }
 0x224   :  { %3243 = vmatprep.subr.mxu1 %v5330_v0 }
 0x225   :  { %3244 = vmatpush3.msra.mxu1 %v4108_v20 }
 0x226   :  { %3245 = vmatprep.subr.mxu1 %v5330_v0 }
 0x227   :  { %3246 = vmatpush3.msra.mxu1 %v4112_v22 }
 0x228   :  { %3247 = vmatprep.subr.mxu1 %v5330_v0 }
 0x229   :  { %3248 = vmatpush3.msra.mxu1 %v4116_v24 }
 0x22a   :  { %3249 = vmatprep.subr.mxu1 %v5330_v0 }
 0x22b   :  { %3250 = vmatpush3.msra.mxu1 %v4120_v26 }
 0x22c   :  { %3251 = vmatprep.subr.mxu1 %v5330_v0 }
 0x22d   :  { %3252 = vmatpush3.msra.mxu1 %v4124_v28 }
 0x22e   :  { %3253 = vmatprep.subr.mxu1 %v5330_v0 }
 0x22f   :  { %3254 = vmatpush3.msra.mxu1 %v4129_v31 }
 0x230   :  { %3255 = vmatprep.subr.mxu1 %v5330_v0 }
 0x231   :  { %3256 = vmatpush3.msra.mxu1 %v4132_v33 }
 0x232   :  { %3258 = vmatmul.mubr.msk.f32.vlgmr.msra.gmra.mxu1 %vm605_vm3, %v5337_v49  ;;  %3295 = vmatprep.subr.mxu1 %v5330_v0 }
 0x233   :  { %3296 = vmatpush3.msra.mxu1 %v4208_v57  ;;  %3327 = vmatprep.mubr.msk.f32.mxu1 %vm4003_vm0, %v5330_v0  ;;  %v697_v57 = vmul.f32 0.9048374, %v4380_v21 }
 0x234   :  { %3297 = vmatprep.subr.mxu1 %v5330_v0 }
 0x235   :  { %3298 = vmatpush3.msra.mxu1 %v4210_v58 }
 0x236   :  { %3299 = vmatprep.subr.mxu1 %v5330_v0 }
 0x237   :  { %3300 = vmatpush3.msra.mxu1 %v4214_v59 }
 0x238   :  { %3301 = vmatprep.subr.mxu1 %v5330_v0 }
 0x239   :  { %3302 = vmatpush3.msra.mxu1 %v4218_v60 }
 0x23a   :  { %3303 = vmatprep.subr.mxu1 %v5330_v0 }
 0x23b   :  { %3304 = vmatpush3.msra.mxu1 %v4222_v61 }
 0x23c   :  { %3305 = vmatprep.subr.mxu1 %v5330_v0 }
 0x23d   :  { %3306 = vmatpush3.msra.mxu1 %v4226_v62 }
 0x23e   :  { %3307 = vmatprep.subr.mxu1 %v5330_v0 }
 0x23f   :  { %3308 = vmatpush3.msra.mxu1 %v4230_v63  ;;  %v4573_v63 = vld [vmem:[#allocation8 + $0x58] sm:$0xff] }
 0x240   :  { %3309 = vmatprep.subr.mxu1 %v5330_v0 }
 0x241   :  { %3310 = vmatpush3.msra.mxu1 %v4234_v1  ;;  %v4577_v1 = vld [vmem:[#allocation8 + $0x50] sm:$0xff] }
 0x242   :  { %3311 = vmatprep.subr.mxu1 %v5330_v0 }
 0x243   :  { %3312 = vmatpush3.msra.mxu1 %v4238_v2  ;;  %v4581_v2 = vld [vmem:[#allocation8 + $0x48] sm:$0xff] }
 0x244   :  { %3313 = vmatprep.subr.mxu1 %v5330_v0 }
 0x245   :  { %3314 = vmatpush3.msra.mxu1 %v4244_v5 }
 0x246   :  { %3315 = vmatprep.subr.mxu1 %v5330_v0 }
 0x247   :  { %3316 = vmatpush3.msra.mxu1 %v4248_v7 }
 0x248   :  { %3317 = vmatprep.subr.mxu1 %v5330_v0 }
 0x249   :  { %3318 = vmatpush3.msra.mxu1 %v4252_v9 }
 0x24a   :  { %3319 = vmatprep.subr.mxu1 %v5330_v0 }
 0x24b   :  { %3320 = vmatpush3.msra.mxu1 %v4256_v11 }
 0x24c   :  { %3321 = vmatprep.subr.mxu1 %v5330_v0 }
 0x24d   :  { %3322 = vmatpush3.msra.mxu1 %v4258_v13 }
 0x24e   :  { %3323 = vmatprep.subr.mxu1 %v5330_v0 }
 0x24f   :  { %3324 = vmatpush3.msra.mxu1 %v4347_v38  ;;  %v4622_v38 = vld [vmem:[#allocation9 + $0x78] sm:$0xff] }
 0x250   :  { %3325 = vmatprep.subr.mxu1 %v5330_v0 }
 0x251   :  { %3326 = vmatpush3.msra.mxu1 %v4352_v40 }
 0x252   :  { %3365 = vmatprep.subr.mxu1 %v5330_v0 }
 0x2ac   :  { %v4495_v3 = vpop.f32.mrf.mxu1 }
 0x2ad   :  { %v4498_v4 = vmul.f32 0.09516257, %v4495_v3 }
 0x2ae   :  { %v3119_v6 = vpop.f32.mrf.mxu1 }
 0x2af   :  { %511 = vst [vmem:[#allocation12] sm:$0xff] %v4498_v4 }
 0x2d2   :  { %v691_v10 = vpop.f32.mrf.mxu1 }
 0x2d3   :  { %v4502_v12 = vadd.f32 %v695_v8, %v691_v10  ;;  %v4680_v10 = vld [vmem:[#allocation9 + $0x10] sm:$0xff] }
 0x2d4   :  { %v3189_v14 = vpop.f32.mrf.mxu1 }
 0x2d5   :  { %v698_v58 = vmul.f32 0.09516257, %v4502_v12 }
 0x2d7   :  { %v699_v59 = vadd.f32 %v698_v58, %v697_v57  ;;  %v4685_v58 = vld [vmem:[#allocation9 + $0x8] sm:$0xff] }
 0x2d9   :  { %vm700_vm4 = vcmp.gt.f32.partialorder %v699_v59, 1.0 }
 0x2da   :  { %v701_v60 = vsel %vm700_vm4, 1.0, %v5330_v0  ;;  %3223 = vmatmul.mubr.msk.f32.vlgmr.msra.gmra.mxu0 %vm700_vm4, %v5337_v49 }
 0x2db   :  { %v702_v61 = vsub.f32 1.0, %v701_v60  ;;  %3261 = vmatpush3.msra.mxu0 %v4137_v36  ;;  %3292 = vmatprep.mubr.msk.f32.mxu0 %vm4003_vm0, %v5330_v0  ;;  %v200_v36 = vadd.f32 %v4269_v19, %v4361_v52  ;;  %v4626_v52 = vld [vmem:[#allocation9 + $0x70] sm:$0xff] }
 0x2dc   :  { %3262 = vmatprep.subr.mxu0 %v5330_v0 }
 0x2dd   :  { %3263 = vmatpush3.msra.mxu0 %v4141_v37  ;;  %v4513_v62 = vmul.f32 %v702_v61, %v699_v59 }
 0x2de   :  { %3264 = vmatprep.subr.mxu0 %v5330_v0 }
 0x2df   :  { %3265 = vmatpush3.msra.mxu0 %v4146_v39  ;;  %v981_v9 = vmul.f32 0.9048374, %v4513_v62 }
 0x2e0   :  { %3266 = vmatprep.subr.mxu0 %v5330_v0 }
 0x2e1   :  { %3267 = vmatpush3.msra.mxu0 %v4152_v41  ;;  %v884_v41 = vmul.f32 0.60653067, %v4413_v23  ;;  %v4638_v23 = vld [vmem:[#allocation9 + $0x60] sm:$0xff] }
 0x2e2   :  { %3268 = vmatprep.subr.mxu0 %v5330_v0 }
 0x2e3   :  { %3269 = vmatpush3.msra.mxu0 %v4156_v42 }
 0x2e4   :  { %3270 = vmatprep.subr.mxu0 %v5330_v0 }
 0x2e5   :  { %3271 = vmatpush3.msra.mxu0 %v4160_v43 }
 0x2e6   :  { %3272 = vmatprep.subr.mxu0 %v5330_v0 }
 0x2e7   :  { %3273 = vmatpush3.msra.mxu0 %v4164_v44  ;;  %v886_v44 = vmul.f32 0.9048374, %v4428_v35  ;;  %v4670_v35 = vld [vmem:[#allocation9 + $0x20] sm:$0xff] }
 0x2e8   :  { %3274 = vmatprep.subr.mxu0 %v5330_v0 }
 0x2e9   :  { %3275 = vmatpush3.msra.mxu0 %v4168_v45 }
 0x2ea   :  { %3276 = vmatprep.subr.mxu0 %v5330_v0 }
 0x2eb   :  { %3277 = vmatpush3.msra.mxu0 %v4172_v46 }
 0x2ec   :  { %3278 = vmatprep.subr.mxu0 %v5330_v0 }
 0x2ed   :  { %3279 = vmatpush3.msra.mxu0 %v4176_v47  ;;  %v4551_v47 = vld [vmem:[#allocation8 + $0x78] sm:$0xff] }
 0x2ee   :  { %3280 = vmatprep.subr.mxu0 %v5330_v0 }
 0x2ef   :  { %3281 = vmatpush3.msra.mxu0 %v4180_v48 }
 0x2f0   :  { %3282 = vmatprep.subr.mxu0 %v5330_v0 }
 0x2f1   :  { %3283 = vmatpush3.msra.mxu0 %v4186_v50  ;;  %v4557_v50 = vld [vmem:[#allocation8 + $0x70] sm:$0xff] }
 0x2f2   :  { %v879_v37 = vpop.f32.mrf.mxu1  ;;  %3284 = vmatprep.subr.mxu0 %v5330_v0 }
 0x2f3   :  { %v883_v39 = vadd.f32 %v879_v37, %v200_v36  ;;  %3285 = vmatpush3.msra.mxu0 %v4189_v51 }
 0x2f4   :  { %v3259_v42 = vpop.f32.mrf.mxu1  ;;  %3286 = vmatprep.subr.mxu0 %v5330_v0 }
 0x2f5   :  { %v4541_v43 = vadd.f32 %v884_v41, %v883_v39  ;;  %3287 = vmatpush3.msra.mxu0 %v4193_v54  ;;  %v4563_v54 = vld [vmem:[#allocation8 + $0x68] sm:$0xff]  ;;  %v4719_v41 = vld [vmem:[#allocation8 + $0x40] sm:$0xff]  ;;  %v4723_v42 = vld [vmem:[#allocation8 + $0x38] sm:$0xff] }
 0x2f6   :  { %3288 = vmatprep.subr.mxu0 %v5330_v0 }
 0x2f7   :  { %v887_v45 = vmul.f32 0.09516257, %v4541_v43  ;;  %3289 = vmatpush3.msra.mxu0 %v4197_v55  ;;  %v1168_v14 = vmul.f32 0.60653067, %v4541_v43  ;;  %v4727_v43 = vld [vmem:[#allocation8 + $0x30] sm:$0xff] }
 0x2f8   :  { %3290 = vmatprep.subr.mxu0 %v5330_v0 }
 0x2f9   :  { %v888_v46 = vadd.f32 %v887_v45, %v886_v44  ;;  %3291 = vmatpush3.msra.mxu0 %v4203_v56  ;;  %v4569_v56 = vld [vmem:[#allocation8 + $0x60] sm:$0xff]  ;;  %v4731_v44 = vld [vmem:[#allocation8 + $0x28] sm:$0xff] }
 0x2fa   :  { %3330 = vmatprep.subr.mxu0 %v5330_v0  ;;  %v4735_v45 = vld [vmem:[#allocation8 + $0x20] sm:$0xff] }
 0x2fb   :  { %vm889_vm5 = vcmp.gt.f32.partialorder %v888_v46, 1.0 }
 0x2fc   :  { %v890_v48 = vsel %vm889_vm5, 1.0, %v5330_v0  ;;  %3293 = vmatmul.mubr.msk.f32.vlgmr.msra.gmra.mxu0 %vm889_vm5, %v5337_v49 }
 0x2fd   :  { %v891_v51 = vsub.f32 1.0, %v890_v48  ;;  %3331 = vmatpush3.msra.mxu0 %v4551_v47  ;;  %3362 = vmatprep.mubr.msk.f32.mxu0 %vm4003_vm0, %v5330_v0  ;;  %v4743_v48 = vld [vmem:[#allocation8 + $0x10] sm:$0xff] }
 0x2fe   :  { %3332 = vmatprep.subr.mxu0 %v5330_v0 }
 0x2ff   :  { %3333 = vmatpush3.msra.mxu0 %v4557_v50  ;;  %v4566_v55 = vmul.f32 %v891_v51, %v888_v46  ;;  %v4739_v46 = vld [vmem:[#allocation8 + $0x18] sm:$0xff]  ;;  %v4747_v51 = vld [vmem:[#allocation8 + $0x8] sm:$0xff] }
 0x300   :  { %3334 = vmatprep.subr.mxu0 %v5330_v0 }
 0x301   :  { %3335 = vmatpush3.msra.mxu0 %v4563_v54  ;;  %v1170_v60 = vmul.f32 0.9048374, %v4566_v55  ;;  %v4751_v55 = vld [vmem:[#allocation8] sm:$0xff] }
 0x302   :  { %3336 = vmatprep.subr.mxu0 %v5330_v0 }
 0x303   :  { %3337 = vmatpush3.msra.mxu0 %v4569_v56 }
 0x304   :  { %3338 = vmatprep.subr.mxu0 %v5330_v0 }
 0x305   :  { %3339 = vmatpush3.msra.mxu0 %v4573_v63 }
 0x306   :  { %3340 = vmatprep.subr.mxu0 %v5330_v0 }
 0x307   :  { %3341 = vmatpush3.msra.mxu0 %v4577_v1 }
 0x308   :  { %3342 = vmatprep.subr.mxu0 %v5330_v0 }
 0x309   :  { %3343 = vmatpush3.msra.mxu0 %v4581_v2 }
 0x30a   :  { %3344 = vmatprep.subr.mxu0 %v5330_v0 }
 0x30b   :  { %3345 = vmatpush3.msra.mxu0 %v4100_v16  ;;  %v790_v16 = vmul.f32 0.60653067, %v4495_v3  ;;  %v4674_v3 = vld [vmem:[#allocation9 + $0x18] sm:$0xff] }
 0x30c   :  { %3346 = vmatprep.subr.mxu0 %v5330_v0 }
 0x30d   :  { %3347 = vmatpush3.msra.mxu0 %v4104_v18 }
 0x30e   :  { %3348 = vmatprep.subr.mxu0 %v5330_v0 }
 0x30f   :  { %3349 = vmatpush3.msra.mxu0 %v4108_v20 }
 0x310   :  { %3350 = vmatprep.subr.mxu0 %v5330_v0 }
 0x311   :  { %3351 = vmatpush3.msra.mxu0 %v4112_v22 }
 0x312   :  { %3352 = vmatprep.subr.mxu0 %v5330_v0 }
 0x313   :  { %3353 = vmatpush3.msra.mxu0 %v4116_v24  ;;  %v792_v24 = vmul.f32 0.9048374, %v4498_v4  ;;  %v5338_v4 = vld [vmem:[#allocation17_spill] sm:$0xff] }
 0x314   :  { %3354 = vmatprep.subr.mxu0 %v5330_v0  ;;  %v205_v6 = vadd.f32 %v5338_v4, %v4269_v19  ;;  %v4691_v19 = vld [vmem:[#allocation9] sm:$0xff]  ;;  %v4838_v4 = vld [vmem:[#allocation11 + $0x10] sm:$0xff] }
 0x315   :  { %3355 = vmatpush3.msra.mxu0 %v4120_v26 }
 0x316   :  { %3356 = vmatprep.subr.mxu0 %v5330_v0 }
 0x317   :  { %3357 = vmatpush3.msra.mxu0 %v4124_v28 }
 0x318   :  { %3358 = vmatprep.subr.mxu0 %v5330_v0 }
 0x319   :  { %3359 = vmatpush3.msra.mxu0 %v4129_v31  ;;  %v979_v31 = vmul.f32 0.60653067, %v4502_v12 }
 0x31a   :  { %3360 = vmatprep.subr.mxu0 %v5330_v0 }
 0x31b   :  { %3361 = vmatpush3.msra.mxu0 %v4132_v33 }
 0x31c   :  { %3363 = vmatmul.mubr.msk.f32.vlgmr.msra.gmra.mxu0 %vm889_vm5, %v5337_v49  ;;  %3400 = vmatprep.subr.mxu0 %v5330_v0 }
 0x31d   :  { %3432 = vmatprep.mubr.msk.f32.mxu0 %vm4003_vm0, %v5330_v0 }
 0x39a   :  { %v786_v18 = vpop.f32.mrf.mxu0 }
 0x39b   :  { %v4610_v20 = vadd.f32 %v790_v16, %v786_v18  ;;  %v4761_v16 = vld [vmem:[#allocation11 + $0x78] sm:$0xff]  ;;  %v4763_v18 = vld [vmem:[#allocation11 + $0x70] sm:$0xff] }
 0x39c   :  { %v3224_v22 = vpop.f32.mrf.mxu0  ;;  %3401 = vmatpush3.msra.mxu0 %v4761_v16 }
 0x39d   :  { %v793_v26 = vmul.f32 0.09516257, %v4610_v20  ;;  %3402 = vmatprep.subr.mxu0 %v5330_v0  ;;  %v4768_v22 = vld [vmem:[#allocation11 + $0x68] sm:$0xff] }
 0x39e   :  { %3403 = vmatpush3.msra.mxu0 %v4763_v18 }
 0x39f   :  { %v4614_v28 = vadd.f32 %v793_v26, %v792_v24  ;;  %3404 = vmatprep.subr.mxu0 %v5330_v0  ;;  %v4774_v24 = vld [vmem:[#allocation11 + $0x60] sm:$0xff]  ;;  %v4780_v26 = vld [vmem:[#allocation11 + $0x58] sm:$0xff] }
 0x3a0   :  { %3405 = vmatpush3.msra.mxu0 %v4768_v22 }
 0x3a1   :  { %795 = vst [vmem:[#allocation12 + $0x8] sm:$0xff] %v4614_v28  ;;  %3406 = vmatprep.subr.mxu0 %v5330_v0 }
 0x3a2   :  { %3407 = vmatpush3.msra.mxu0 %v4774_v24 }
 0x3a3   :  { %3408 = vmatprep.subr.mxu0 %v5330_v0 }
 0x3a4   :  { %3409 = vmatpush3.msra.mxu0 %v4780_v26 }
 0x3a5   :  { %3410 = vmatprep.subr.mxu0 %v5330_v0 }
 0x3bc   :  { %v975_v33 = vpop.f32.mrf.mxu0 }
 0x3bd   :  { %v4618_v5 = vadd.f32 %v979_v31, %v975_v33  ;;  %v4786_v31 = vld [vmem:[#allocation11 + $0x50] sm:$0xff]  ;;  %v4792_v33 = vld [vmem:[#allocation11 + $0x48] sm:$0xff] }
 0x3be   :  { %v3294_v7 = vpop.f32.mrf.mxu0  ;;  %3411 = vmatpush3.msra.mxu0 %v4786_v31 }
 0x3bf   :  { %v982_v11 = vmul.f32 0.09516257, %v4618_v5  ;;  %3412 = vmatprep.subr.mxu0 %v5330_v0  ;;  %v4798_v7 = vld [vmem:[#allocation11 + $0x40] sm:$0xff] }
 0x3c0   :  { %3413 = vmatpush3.msra.mxu0 %v4792_v33 }
 0x3c1   :  { %v983_v13 = vadd.f32 %v982_v11, %v981_v9  ;;  %3414 = vmatprep.subr.mxu0 %v5330_v0  ;;  %v4804_v9 = vld [vmem:[#allocation11 + $0x38] sm:$0xff]  ;;  %v4810_v11 = vld [vmem:[#allocation11 + $0x30] sm:$0xff] }
 0x3c2   :  { %3415 = vmatpush3.msra.mxu0 %v4798_v7 }
 0x3c3   :  { %vm984_vm6 = vcmp.gt.f32.partialorder %v983_v13, 1.0  ;;  %3416 = vmatprep.subr.mxu0 %v5330_v0 }
 0x3c4   :  { %v985_v40 = vsel %vm984_vm6, 1.0, %v5330_v0  ;;  %3328 = vmatmul.mubr.msk.f32.vlgmr.msra.gmra.mxu1 %vm984_vm6, %v5337_v49  ;;  %3417 = vmatpush3.msra.mxu0 %v4804_v9 }
 0x3c5   :  { %v986_v53 = vsub.f32 1.0, %v985_v40  ;;  %3366 = vmatpush3.msra.mxu1 %v4622_v38  ;;  %3397 = vmatprep.mubr.msk.f32.mxu1 %vm4003_vm0, %v5330_v0  ;;  %v4822_v40 = vld [vmem:[#allocation11 + $0x20] sm:$0xff] }
 0x3c6   :  { %3367 = vmatprep.subr.mxu1 %v5330_v0  ;;  %3418 = vmatprep.subr.mxu0 %v5330_v0 }
 0x3c7   :  { %3368 = vmatpush3.msra.mxu1 %v4626_v52  ;;  %v4635_v21 = vmul.f32 %v986_v53, %v983_v13  ;;  %v4816_v13 = vld [vmem:[#allocation11 + $0x28] sm:$0xff]  ;;  %3419 = vmatpush3.msra.mxu0 %v4810_v11  ;;  %v4833_v53 = vld [vmem:[#allocation11 + $0x18] sm:$0xff] }
 0x3c8   :  { %3369 = vmatprep.subr.mxu1 %v5330_v0  ;;  %3420 = vmatprep.subr.mxu0 %v5330_v0 }
 0x3c9   :  { %3370 = vmatpush3.msra.mxu1 %v4632_v17  ;;  %3421 = vmatpush3.msra.mxu0 %v4816_v13 }
 0x3ca   :  { %3371 = vmatprep.subr.mxu1 %v5330_v0  ;;  %3422 = vmatprep.subr.mxu0 %v5330_v0 }
 0x3cb   :  { %3372 = vmatpush3.msra.mxu1 %v4638_v23  ;;  %3423 = vmatpush3.msra.mxu0 %v4822_v40 }
 0x3cc   :  { %3373 = vmatprep.subr.mxu1 %v5330_v0  ;;  %3424 = vmatprep.subr.mxu0 %v5330_v0 }
 0x3cd   :  { %3374 = vmatpush3.msra.mxu1 %v4642_v25  ;;  %3425 = vmatpush3.msra.mxu0 %v4833_v53 }
 0x3ce   :  { %3375 = vmatprep.subr.mxu1 %v5330_v0  ;;  %3426 = vmatprep.subr.mxu0 %v5330_v0 }
 0x3cf   :  { %3376 = vmatpush3.msra.mxu1 %v4646_v29  ;;  %3427 = vmatpush3.msra.mxu0 %v4838_v4 }
 0x3d0   :  { %3377 = vmatprep.subr.mxu1 %v5330_v0  ;;  %3428 = vmatprep.subr.mxu0 %v5330_v0 }
 0x3d1   :  { %3378 = vmatpush3.msra.mxu1 %v4650_v30 }
 0x3d2   :  { %3379 = vmatprep.subr.mxu1 %v5330_v0 }
 0x3d3   :  { %3380 = vmatpush3.msra.mxu1 %v4654_v34 }
 0x3d4   :  { %3381 = vmatprep.subr.mxu1 %v5330_v0 }
 0x3d5   :  { %3382 = vmatpush3.msra.mxu1 %v4658_v15 }
 0x3d6   :  { %3383 = vmatprep.subr.mxu1 %v5330_v0 }
 0x3d7   :  { %3384 = vmatpush3.msra.mxu1 %v4662_v27 }
 0x3d8   :  { %3385 = vmatprep.subr.mxu1 %v5330_v0 }
 0x3d9   :  { %3386 = vmatpush3.msra.mxu1 %v4666_v32 }
 0x3da   :  { %3387 = vmatprep.subr.mxu1 %v5330_v0 }
 0x3db   :  { %3388 = vmatpush3.msra.mxu1 %v4670_v35 }
 0x3dc   :  { %v1163_v8 = vpop.f32.mrf.mxu0  ;;  %3389 = vmatprep.subr.mxu1 %v5330_v0 }
 0x3dd   :  { %v1167_v12 = vadd.f32 %v1163_v8, %v205_v6  ;;  %3390 = vmatpush3.msra.mxu1 %v4674_v3  ;;  %v4844_v6 = vld [vmem:[#allocation11 + $0x8] sm:$0xff]  ;;  %v4846_v8 = vld [vmem:[#allocation11] sm:$0xff] }
 0x3de   :  { %v3364_v57 = vpop.f32.mrf.mxu0  ;;  %3391 = vmatprep.subr.mxu1 %v5330_v0  ;;  %5339 = vst [vmem:[#allocation17_spill] sm:$0xff] %v4844_v6  ;;  %5340 = vst [vmem:[#allocation22_spill] sm:$0xff] %v4846_v8  ;;  %3429 = vmatpush3.msra.mxu0 %v4844_v6 }
 0x3df   :  { %v4687_v59 = vadd.f32 %v1168_v14, %v1167_v12  ;;  %3392 = vmatpush3.msra.mxu1 %v4680_v10  ;;  %3430 = vmatprep.subr.mxu0 %v5330_v0  ;;  %v1074_v12 = vmul.f32 0.60653067, %v4610_v20  ;;  %v1265_v20 = vmul.f32 0.9048374, %v4635_v21  ;;  %v5342_v21 = vld [vmem:[#allocation19_spill] sm:$0xff] }
 0x3e0   :  { %3393 = vmatprep.subr.mxu1 %v5330_v0  ;;  %3431 = vmatpush3.msra.mxu0 %v4846_v8 }
 0x3e1   :  { %v1171_v61 = vmul.f32 0.09516257, %v4687_v59  ;;  %3394 = vmatpush3.msra.mxu1 %v4685_v58  ;;  %3470 = vmatprep.subr.mxu0 %v5330_v0 }
 0x3e2   :  { %3395 = vmatprep.subr.mxu1 %v5330_v0 }
 0x3e3   :  { %v1172_v62 = vadd.f32 %v1171_v61, %v1170_v60  ;;  %3396 = vmatpush3.msra.mxu1 %v4691_v19  ;;  %v1076_v61 = vmul.f32 0.9048374, %v4614_v28 }
 0x3e4   :  { %3435 = vmatprep.subr.mxu1 %v5330_v0 }
 0x3e5   :  { %vm1173_vm7 = vcmp.gt.f32.partialorder %v1172_v62, 1.0 }
 0x3e6   :  { %v1174_v36 = vsel %vm1173_vm7, 1.0, %v5330_v0  ;;  %3398 = vmatmul.mubr.msk.f32.vlgmr.msra.gmra.mxu1 %vm1173_vm7, %v5337_v49 }
 0x3e7   :  { %v1175_v37 = vsub.f32 1.0, %v1174_v36  ;;  %3436 = vmatpush3.msra.mxu1 %v4551_v47  ;;  %3467 = vmatprep.mubr.msk.f32.mxu1 %vm4003_vm0, %v5330_v0 }
 0x3e8   :  { %3437 = vmatprep.subr.mxu1 %v5330_v0 }
 0x3e9   :  { %3438 = vmatpush3.msra.mxu1 %v4557_v50  ;;  %v4708_v39 = vmul.f32 %v1175_v37, %v1172_v62  ;;  %v1263_v37 = vmul.f32 0.60653067, %v4618_v5  ;;  %v4901_v5 = vld [vmem:[%s5321_s2] ss:$0 sm:$0xff]  ;;  %s4005_s2 = smov [#allocation12]  }
 0x3ea   :  { %3439 = vmatprep.subr.mxu1 %v5330_v0  ;;  %s2501_s23 = sshll.u32 %s4005_s2, 4  ;;  %s2502_s23 = int_to_ptr.vmem [resolvable:$true] %s2501_s23 }
 0x3eb   :  { %3440 = vmatpush3.msra.mxu1 %v4563_v54  ;;  %s3967_s24 = scalar_lea.vmem %s2502_s23, 1024  ;;  %p3972_p12 = scmp.lt.s32.totalorder %s2502_s23, %s2502_s23 }
 0x3ec   :  { %3441 = vmatprep.subr.mxu1 %v5330_v0  ;;  %p3968_p11 = scmp.ne.s32.totalorder %s2502_s23, %s3967_s24  ;;  %p3973_p13 = scmp.lt.s32.totalorder %s3967_s24, %s3967_s24 }
 0x3ed   :  { %3442 = vmatpush3.msra.mxu1 %v4569_v56 }
 0x3ee   :  { %3443 = vmatprep.subr.mxu1 %v5330_v0  ;;  %p3974_p0 = por %p3973_p13, %p3972_p12 }
 0x3ef   :  { %3444 = vmatpush3.msra.mxu1 %v4573_v63 }
 0x3f0   :  { %3445 = vmatprep.subr.mxu1 %v5330_v0  ;;  %p3975_p1 = pnand %p3974_p0, %p3968_p11 }
 0x3f1   :  { %3446 = vmatpush3.msra.mxu1 %v4577_v1 }
 0x3f2   :  { %3447 = vmatprep.subr.mxu1 %v5330_v0 }
 0x3f3   :  { %3448 = vmatpush3.msra.mxu1 %v4581_v2 }
 0x3f4   :  { %3449 = vmatprep.subr.mxu1 %v5330_v0 }
 0x3f5   :  { %3450 = vmatpush3.msra.mxu1 %v4719_v41 }
 0x3f6   :  { %3451 = vmatprep.subr.mxu1 %v5330_v0 }
 0x3f7   :  { %3452 = vmatpush3.msra.mxu1 %v4723_v42 }
 0x3f8   :  { %3453 = vmatprep.subr.mxu1 %v5330_v0 }
 0x3f9   :  { %3454 = vmatpush3.msra.mxu1 %v4727_v43 }
 0x3fa   :  { %3455 = vmatprep.subr.mxu1 %v5330_v0 }
 0x3fb   :  { %3456 = vmatpush3.msra.mxu1 %v4731_v44 }
 0x3fc   :  { %3457 = vmatprep.subr.mxu1 %v5330_v0 }
 0x3fd   :  { %3458 = vmatpush3.msra.mxu1 %v4735_v45 }
 0x3fe   :  { %3459 = vmatprep.subr.mxu1 %v5330_v0 }
 0x3ff   :  { %3460 = vmatpush3.msra.mxu1 %v4739_v46 }
 0x400   :  { %3461 = vmatprep.subr.mxu1 %v5330_v0 }
 0x401   :  { %3462 = vmatpush3.msra.mxu1 %v4743_v48 }
 0x402   :  { %3463 = vmatprep.subr.mxu1 %v5330_v0 }
 0x403   :  { %3464 = vmatpush3.msra.mxu1 %v4747_v51 }
 0x404   :  { %3465 = vmatprep.subr.mxu1 %v5330_v0 }
 0x405   :  { %3466 = vmatpush3.msra.mxu1 %v4751_v55 }
 0x406   :  { %3468 = vmatmul.mubr.msk.f32.vlgmr.msra.gmra.mxu1 %vm1173_vm7, %v5337_v49  ;;  %3505 = vmatprep.subr.mxu1 %v5330_v0 }
 0x407   :  { %3537 = vmatprep.mubr.msk.f32.mxu1 %vm4003_vm0, %v5330_v0  ;;  %3506 = vmatpush3.msra.mxu1 %v4761_v16 }
 0x408   :  { %3507 = vmatprep.subr.mxu1 %v5330_v0 }
 0x409   :  { %3508 = vmatpush3.msra.mxu1 %v4763_v18 }
 0x40a   :  { %3509 = vmatprep.subr.mxu1 %v5330_v0 }
 0x40b   :  { %3510 = vmatpush3.msra.mxu1 %v4768_v22 }
 0x40c   :  { %3511 = vmatprep.subr.mxu1 %v5330_v0 }
 0x40d   :  { %3512 = vmatpush3.msra.mxu1 %v4774_v24 }
 0x40e   :  { %3513 = vmatprep.subr.mxu1 %v5330_v0 }
 0x40f   :  { %3514 = vmatpush3.msra.mxu1 %v4780_v26 }
 0x410   :  { %3515 = vmatprep.subr.mxu1 %v5330_v0 }
 0x411   :  { %3516 = vmatpush3.msra.mxu1 %v4786_v31 }
 0x412   :  { %3517 = vmatprep.subr.mxu1 %v5330_v0 }
 0x413   :  { %3518 = vmatpush3.msra.mxu1 %v4792_v33 }
 0x414   :  { %3519 = vmatprep.subr.mxu1 %v5330_v0 }
 0x415   :  { %3520 = vmatpush3.msra.mxu1 %v4798_v7 }
 0x416   :  { %3521 = vmatprep.subr.mxu1 %v5330_v0 }
 0x417   :  { %3522 = vmatpush3.msra.mxu1 %v4804_v9 }
 0x418   :  { %3523 = vmatprep.subr.mxu1 %v5330_v0 }
 0x419   :  { %3524 = vmatpush3.msra.mxu1 %v4810_v11 }
 0x41a   :  { %3525 = vmatprep.subr.mxu1 %v5330_v0 }
 0x41b   :  { %3526 = vmatpush3.msra.mxu1 %v4816_v13 }
 0x41c   :  { %3527 = vmatprep.subr.mxu1 %v5330_v0 }
 0x41d   :  { %3528 = vmatpush3.msra.mxu1 %v4822_v40 }
 0x41e   :  { %3529 = vmatprep.subr.mxu1 %v5330_v0 }
 0x41f   :  { %3530 = vmatpush3.msra.mxu1 %v4833_v53 }
 0x420   :  { %3531 = vmatprep.subr.mxu1 %v5330_v0 }
 0x421   :  { %3532 = vmatpush3.msra.mxu1 %v4838_v4 }
 0x422   :  { %3533 = vmatprep.subr.mxu1 %v5330_v0 }
 0x423   :  { %3534 = vmatpush3.msra.mxu1 %v4844_v6 }
 0x424   :  { %3535 = vmatprep.subr.mxu1 %v5330_v0 }
 0x425   :  { %3536 = vmatpush3.msra.mxu1 %v4846_v8 }
 0x426   :  { %3575 = vmatprep.subr.mxu1 %v5330_v0 }
 0x484   :  { %v1070_v14 = vpop.f32.mrf.mxu1 }
 0x485   :  { %v4858_v57 = vadd.f32 %v1074_v12, %v1070_v14 }
 0x486   :  { %v3329_v60 = vpop.f32.mrf.mxu1 }
 0x487   :  { %v1077_v62 = vmul.f32 0.09516257, %v4858_v57  ;;  %v5341_v60 = vmov 0.0  }
 0x489   :  { %v4862_v36 = vadd.f32 %v1077_v62, %v1076_v61 }
 0x48b   :  { %1079 = vst [vmem:[#allocation12 + $0x10] sm:$0xff] %v4862_v36 }
 0x4a6   :  { %v1259_v8 = vpop.f32.mrf.mxu1 }
 0x4a7   :  { %v4866_v6 = vadd.f32 %v1263_v37, %v1259_v8  ;;  %v210_v8 = vadd.f32 %v4901_v5, %v5342_v21 }
 0x4a8   :  { %v3399_v0 = vpop.f32.mrf.mxu1 }
 0x4a9   :  { %v1266_v12 = vmul.f32 0.09516257, %v4866_v6 }
 0x4ab   :  { %v1267_v14 = vadd.f32 %v1266_v12, %v1265_v20  ;;  %v1452_v20 = vmul.f32 0.60653067, %v4687_v59 }
 0x4ad   :  { %vm1268_vm8 = vcmp.gt.f32.partialorder %v1267_v14, 1.0 }
 0x4ae   :  { %v1269_v28 = vsel %vm1268_vm8, 1.0, %v5341_v60  ;;  %3433 = vmatmul.mubr.msk.f32.vlgmr.msra.gmra.mxu0 %vm1268_vm8, %v5337_v49 }
 0x4af   :  { %v1270_v61 = vsub.f32 1.0, %v1269_v28  ;;  %3471 = vmatpush3.msra.mxu0 %v4622_v38  ;;  %3502 = vmatprep.mubr.msk.f32.mxu0 %vm4003_vm0, %v5341_v60  ;;  %v1454_v28 = vmul.f32 0.9048374, %v4708_v39 }
 0x4b0   :  { %3472 = vmatprep.subr.mxu0 %v5341_v60 }
 0x4b1   :  { %3473 = vmatpush3.msra.mxu0 %v4626_v52  ;;  %v4877_v0 = vmul.f32 %v1270_v61, %v1267_v14 }
 0x4b2   :  { %3474 = vmatprep.subr.mxu0 %v5341_v60 }
 0x4b3   :  { %3475 = vmatpush3.msra.mxu0 %v4632_v17 }
 0x4b4   :  { %3476 = vmatprep.subr.mxu0 %v5341_v60 }
 0x4b5   :  { %3477 = vmatpush3.msra.mxu0 %v4638_v23 }
 0x4b6   :  { %3478 = vmatprep.subr.mxu0 %v5341_v60 }
 0x4b7   :  { %3479 = vmatpush3.msra.mxu0 %v4642_v25 }
 0x4b8   :  { %3480 = vmatprep.subr.mxu0 %v5341_v60 }
 0x4b9   :  { %3481 = vmatpush3.msra.mxu0 %v4646_v29 }
 0x4ba   :  { %3482 = vmatprep.subr.mxu0 %v5341_v60 }
 0x4bb   :  { %3483 = vmatpush3.msra.mxu0 %v4650_v30 }
 0x4bc   :  { %3484 = vmatprep.subr.mxu0 %v5341_v60 }
 0x4bd   :  { %3485 = vmatpush3.msra.mxu0 %v4654_v34 }
 0x4be   :  { %3486 = vmatprep.subr.mxu0 %v5341_v60 }
 0x4bf   :  { %3487 = vmatpush3.msra.mxu0 %v4658_v15 }
 0x4c0   :  { %3488 = vmatprep.subr.mxu0 %v5341_v60 }
 0x4c1   :  { %3489 = vmatpush3.msra.mxu0 %v4662_v27 }
 0x4c2   :  { %3490 = vmatprep.subr.mxu0 %v5341_v60 }
 0x4c3   :  { %3491 = vmatpush3.msra.mxu0 %v4666_v32 }
 0x4c4   :  { %3492 = vmatprep.subr.mxu0 %v5341_v60 }
 0x4c5   :  { %3493 = vmatpush3.msra.mxu0 %v4670_v35 }
 0x4c6   :  { %v1447_v62 = vpop.f32.mrf.mxu1  ;;  %3494 = vmatprep.subr.mxu0 %v5341_v60 }
 0x4c7   :  { %v1451_v37 = vadd.f32 %v1447_v62, %v210_v8  ;;  %3495 = vmatpush3.msra.mxu0 %v4674_v3 }
 0x4c8   :  { %v3469_v12 = vpop.f32.mrf.mxu1  ;;  %3496 = vmatprep.subr.mxu0 %v5341_v60 }
 0x4c9   :  { %v4910_v14 = vadd.f32 %v1452_v20, %v1451_v37  ;;  %3497 = vmatpush3.msra.mxu0 %v4680_v10  ;;  %v5125_v12 = vld [vmem:[#allocation9 + $0x78] sm:$0xff] }
 0x4ca   :  { %3498 = vmatprep.subr.mxu0 %v5341_v60 }
 0x4cb   :  { %v1455_v61 = vmul.f32 0.09516257, %v4910_v14  ;;  %3499 = vmatpush3.msra.mxu0 %v4685_v58 }
 0x4cc   :  { %3500 = vmatprep.subr.mxu0 %v5341_v60 }
 0x4cd   :  { %v1456_v59 = vadd.f32 %v1455_v61, %v1454_v28  ;;  %3501 = vmatpush3.msra.mxu0 %v4691_v19  ;;  %v5129_v28 = vld [vmem:[#allocation9 + $0x70] sm:$0xff] }
 0x4ce   :  { %3540 = vmatprep.subr.mxu0 %v5341_v60 }
 0x4cf   :  { %vm1457_vm9 = vcmp.gt.f32.partialorder %v1456_v59, 1.0 }
 0x4d0   :  { %v1458_v21 = vsel %vm1457_vm9, 1.0, %v5341_v60  ;;  %3503 = vmatmul.mubr.msk.f32.vlgmr.msra.gmra.mxu0 %vm1457_vm9, %v5337_v49 }
 0x4d1   :  { %v1459_v8 = vsub.f32 1.0, %v1458_v21  ;;  %3541 = vmatpush3.msra.mxu0 %v4551_v47  ;;  %3572 = vmatprep.mubr.msk.f32.mxu0 %vm4003_vm0, %v5341_v60  ;;  %v5343_v47 = vld [vmem:[#allocation17_spill] sm:$0xff] }
 0x4d2   :  { %3542 = vmatprep.subr.mxu0 %v5341_v60 }
 0x4d3   :  { %3543 = vmatpush3.msra.mxu0 %v4557_v50  ;;  %v4929_v39 = vmul.f32 %v1459_v8, %v1456_v59  ;;  %v5344_v50 = vld [vmem:[#allocation22_spill] sm:$0xff]  ;;  %v5141_v8 = vld [vmem:[#allocation9 + $0x60] sm:$0xff] }
 0x4d4   :  { %3544 = vmatprep.subr.mxu0 %v5341_v60  ;;  %v5135_v59 = vld [vmem:[#allocation9 + $0x68] sm:$0xff] }
 0x4d5   :  { %3545 = vmatpush3.msra.mxu0 %v4563_v54  ;;  %v1358_v54 = vmul.f32 0.60653067, %v4858_v57  ;;  %v5084_v57 = vld [vmem:[#allocation8 + $0x48] sm:$0xff] }
 0x4d6   :  { %3546 = vmatprep.subr.mxu0 %v5341_v60 }
 0x4d7   :  { %3547 = vmatpush3.msra.mxu0 %v4569_v56 }
 0x4d8   :  { %3548 = vmatprep.subr.mxu0 %v5341_v60 }
 0x4d9   :  { %3549 = vmatpush3.msra.mxu0 %v4573_v63 }
 0x4da   :  { %3550 = vmatprep.subr.mxu0 %v5341_v60 }
 0x4db   :  { %3551 = vmatpush3.msra.mxu0 %v4577_v1 }
 0x4dc   :  { %3552 = vmatprep.subr.mxu0 %v5341_v60 }
 0x4dd   :  { %3553 = vmatpush3.msra.mxu0 %v4581_v2  ;;  %v1360_v2 = vmul.f32 0.9048374, %v4862_v36 }
 0x4de   :  { %3554 = vmatprep.subr.mxu0 %v5341_v60 }
 0x4df   :  { %3555 = vmatpush3.msra.mxu0 %v4719_v41 }
 0x4e0   :  { %3556 = vmatprep.subr.mxu0 %v5341_v60 }
 0x4e1   :  { %3557 = vmatpush3.msra.mxu0 %v4723_v42 }
 0x4e2   :  { %3558 = vmatprep.subr.mxu0 %v5341_v60 }
 0x4e3   :  { %3559 = vmatpush3.msra.mxu0 %v4727_v43 }
 0x4e4   :  { %3560 = vmatprep.subr.mxu0 %v5341_v60 }
 0x4e5   :  { %3561 = vmatpush3.msra.mxu0 %v4731_v44 }
 0x4e6   :  { %3562 = vmatprep.subr.mxu0 %v5341_v60 }
 0x4e7   :  { %3563 = vmatpush3.msra.mxu0 %v4735_v45 }
 0x4e8   :  { %3564 = vmatprep.subr.mxu0 %v5341_v60 }
 0x4e9   :  { %3565 = vmatpush3.msra.mxu0 %v4739_v46 }
 0x4ea   :  { %3566 = vmatprep.subr.mxu0 %v5341_v60 }
 0x4eb   :  { %3567 = vmatpush3.msra.mxu0 %v4743_v48 }
 0x4ec   :  { %3568 = vmatprep.subr.mxu0 %v5341_v60 }
 0x4ed   :  { %3569 = vmatpush3.msra.mxu0 %v4747_v51 }
 0x4ee   :  { %3570 = vmatprep.subr.mxu0 %v5341_v60 }
 0x4ef   :  { %3571 = vmatpush3.msra.mxu0 %v4751_v55 }
 0x4f0   :  { %3573 = vmatmul.mubr.msk.f32.vlgmr.msra.gmra.mxu0 %vm1457_vm9, %v5337_v49  ;;  %3610 = vmatprep.subr.mxu0 %v5341_v60 }
 0x4f1   :  { %3611 = vmatpush3.msra.mxu0 %v4761_v16  ;;  %3642 = vmatprep.mubr.msk.f32.mxu0 %vm4003_vm0, %v5341_v60 }
 0x4f2   :  { %3612 = vmatprep.subr.mxu0 %v5341_v60 }
 0x4f3   :  { %3613 = vmatpush3.msra.mxu0 %v4763_v18 }
 0x4f4   :  { %3614 = vmatprep.subr.mxu0 %v5341_v60 }
 0x4f5   :  { %3615 = vmatpush3.msra.mxu0 %v4768_v22  ;;  %v1547_v22 = vmul.f32 0.60653067, %v4866_v6  ;;  %v5080_v6 = vld [vmem:[#allocation8 + $0x50] sm:$0xff] }
 0x4f6   :  { %3616 = vmatprep.subr.mxu0 %v5341_v60 }
 0x4f7   :  { %3617 = vmatpush3.msra.mxu0 %v4774_v24 }
 0x4f8   :  { %3618 = vmatprep.subr.mxu0 %v5341_v60 }
 0x4f9   :  { %3619 = vmatpush3.msra.mxu0 %v4780_v26 }
 0x4fa   :  { %3620 = vmatprep.subr.mxu0 %v5341_v60 }
 0x4fb   :  { %3621 = vmatpush3.msra.mxu0 %v4786_v31 }
 0x4fc   :  { %3622 = vmatprep.subr.mxu0 %v5341_v60 }
 0x4fd   :  { %3623 = vmatpush3.msra.mxu0 %v4792_v33  ;;  %v1549_v33 = vmul.f32 0.9048374, %v4877_v0 }
 0x4fe   :  { %3624 = vmatprep.subr.mxu0 %v5341_v60 }
 0x4ff   :  { %3625 = vmatpush3.msra.mxu0 %v4798_v7 }
 0x500   :  { %3626 = vmatprep.subr.mxu0 %v5341_v60 }
 0x501   :  { %3627 = vmatpush3.msra.mxu0 %v4804_v9 }
 0x502   :  { %3628 = vmatprep.subr.mxu0 %v5341_v60 }
 0x503   :  { %3629 = vmatpush3.msra.mxu0 %v4810_v11 }
 0x504   :  { %3630 = vmatprep.subr.mxu0 %v5341_v60 }
 0x505   :  { %3631 = vmatpush3.msra.mxu0 %v4816_v13 }
 0x506   :  { %3632 = vmatprep.subr.mxu0 %v5341_v60 }
 0x507   :  { %3633 = vmatpush3.msra.mxu0 %v4822_v40 }
 0x508   :  { %3634 = vmatprep.subr.mxu0 %v5341_v60 }
 0x509   :  { %3635 = vmatpush3.msra.mxu0 %v4833_v53  ;;  %v5072_v53 = vld [vmem:[#allocation8 + $0x60] sm:$0xff] }
 0x50a   :  { %3636 = vmatprep.subr.mxu0 %v5341_v60 }
 0x50b   :  { %3637 = vmatpush3.msra.mxu0 %v4838_v4  ;;  %v5076_v4 = vld [vmem:[#allocation8 + $0x58] sm:$0xff] }
 0x50c   :  { %3638 = vmatprep.subr.mxu0 %v5341_v60 }
 0x50d   :  { %3639 = vmatpush3.msra.mxu0 %v5343_v47  ;;  %v5149_v47 = vld [vmem:[#allocation9 + $0x50] sm:$0xff] }
 0x50e   :  { %3640 = vmatprep.subr.mxu0 %v5341_v60 }
 0x50f   :  { %3641 = vmatpush3.msra.mxu0 %v5344_v50  ;;  %v5153_v50 = vld [vmem:[#allocation9 + $0x48] sm:$0xff] }
 0x510   :  { %3680 = vmatprep.subr.mxu0 %v5341_v60 }
 0x56e   :  { %v1354_v56 = vpop.f32.mrf.mxu0 }
 0x56f   :  { %v4997_v63 = vadd.f32 %v1358_v54, %v1354_v56  ;;  %v5157_v54 = vld [vmem:[#allocation9 + $0x40] sm:$0xff]  ;;  %v5161_v56 = vld [vmem:[#allocation9 + $0x38] sm:$0xff] }
 0x570   :  { %v3434_v1 = vpop.f32.mrf.mxu0 }
 0x571   :  { %v1361_v16 = vmul.f32 0.09516257, %v4997_v63  ;;  %v5169_v1 = vld [vmem:[#allocation9 + $0x28] sm:$0xff] }
 0x573   :  { %v5001_v18 = vadd.f32 %v1361_v16, %v1360_v2  ;;  %v5173_v2 = vld [vmem:[#allocation9 + $0x20] sm:$0xff]  ;;  %v5177_v16 = vld [vmem:[#allocation9 + $0x18] sm:$0xff] }
 0x575   :  { %1363 = vst [vmem:[#allocation12 + $0x18] sm:$0xff] %v5001_v18 }
 0x590   :  { %v1543_v24 = vpop.f32.mrf.mxu0 }
 0x591   :  { %v5005_v26 = vadd.f32 %v1547_v22, %v1543_v24 }
 0x592   :  { %v3504_v31 = vpop.f32.mrf.mxu0 }
 0x593   :  { %v1550_v7 = vmul.f32 0.09516257, %v5005_v26 }
 0x595   :  { %v1551_v9 = vadd.f32 %v1550_v7, %v1549_v33 }
 0x597   :  { %vm1552_vm10 = vcmp.gt.f32.partialorder %v1551_v9, 1.0 }
 0x598   :  { %v1553_v11 = vsel %vm1552_vm10, 1.0, %v5341_v60  ;;  %3538 = vmatmul.mubr.msk.f32.vlgmr.msra.gmra.mxu1 %vm1552_vm10, %v5337_v49 }
 0x599   :  { %v1554_v13 = vsub.f32 1.0, %v1553_v11  ;;  %3576 = vmatpush3.msra.mxu1 %v4622_v38  ;;  %3607 = vmatprep.mubr.msk.f32.mxu1 %vm4003_vm0, %v5341_v60  ;;  %v5345_v38 = vld [vmem:[#allocation18_spill] sm:$0xff] }
 0x59a   :  { %3577 = vmatprep.subr.mxu1 %v5341_v60 }
 0x59b   :  { %3578 = vmatpush3.msra.mxu1 %v4626_v52  ;;  %v5016_v40 = vmul.f32 %v1554_v13, %v1551_v9  ;;  %v215_v52 = vadd.f32 %v4901_v5, %v5345_v38  ;;  %v5188_v9 = vld [vmem:[#allocation9 + $0x8] sm:$0xff]  ;;  %v5194_v13 = vld [vmem:[#allocation9] sm:$0xff] }
 0x59c   :  { %3579 = vmatprep.subr.mxu1 %v5341_v60 }
 0x59d   :  { %3580 = vmatpush3.msra.mxu1 %v4632_v17  ;;  %v1833_v62 = vmul.f32 0.9048374, %v5016_v40 }
 0x59e   :  { %3581 = vmatprep.subr.mxu1 %v5341_v60 }
 0x59f   :  { %3582 = vmatpush3.msra.mxu1 %v4638_v23 }
 0x5a0   :  { %3583 = vmatprep.subr.mxu1 %v5341_v60 }
 0x5a1   :  { %3584 = vmatpush3.msra.mxu1 %v4642_v25  ;;  %v1736_v25 = vmul.f32 0.60653067, %v4910_v14 }
 0x5a2   :  { %3585 = vmatprep.subr.mxu1 %v5341_v60 }
 0x5a3   :  { %3586 = vmatpush3.msra.mxu1 %v4646_v29 }
 0x5a4   :  { %3587 = vmatprep.subr.mxu1 %v5341_v60 }
 0x5a5   :  { %3588 = vmatpush3.msra.mxu1 %v4650_v30 }
 0x5a6   :  { %3589 = vmatprep.subr.mxu1 %v5341_v60 }
 0x5a7   :  { %3590 = vmatpush3.msra.mxu1 %v4654_v34  ;;  %v1738_v34 = vmul.f32 0.9048374, %v4929_v39  ;;  %v5145_v39 = vld [vmem:[#allocation9 + $0x58] sm:$0xff] }
 0x5a8   :  { %3591 = vmatprep.subr.mxu1 %v5341_v60 }
 0x5a9   :  { %3592 = vmatpush3.msra.mxu1 %v4658_v15 }
 0x5aa   :  { %3593 = vmatprep.subr.mxu1 %v5341_v60 }
 0x5ab   :  { %3594 = vmatpush3.msra.mxu1 %v4662_v27 }
 0x5ac   :  { %3595 = vmatprep.subr.mxu1 %v5341_v60 }
 0x5ad   :  { %3596 = vmatpush3.msra.mxu1 %v4666_v32  ;;  %v5054_v32 = vld [vmem:[#allocation8 + $0x78] sm:$0xff] }
 0x5ae   :  { %3597 = vmatprep.subr.mxu1 %v5341_v60 }
 0x5af   :  { %3598 = vmatpush3.msra.mxu1 %v4670_v35 }
 0x5b0   :  { %v1731_v17 = vpop.f32.mrf.mxu0  ;;  %3599 = vmatprep.subr.mxu1 %v5341_v60 }
 0x5b1   :  { %v1735_v23 = vadd.f32 %v1731_v17, %v215_v52  ;;  %3600 = vmatpush3.msra.mxu1 %v4674_v3  ;;  %v5060_v3 = vld [vmem:[#allocation8 + $0x70] sm:$0xff] }
 0x5b2   :  { %v3574_v29 = vpop.f32.mrf.mxu0  ;;  %3601 = vmatprep.subr.mxu1 %v5341_v60 }
 0x5b3   :  { %v5044_v30 = vadd.f32 %v1736_v25, %v1735_v23  ;;  %3602 = vmatpush3.msra.mxu1 %v4680_v10  ;;  %v2225_v29 = vld [vmem:[#allocation8 + $0x40] sm:$0xff] }
 0x5b4   :  { %3603 = vmatprep.subr.mxu1 %v5341_v60 }
 0x5b5   :  { %v1739_v15 = vmul.f32 0.09516257, %v5044_v30  ;;  %3604 = vmatpush3.msra.mxu1 %v4685_v58  ;;  %v5066_v58 = vld [vmem:[#allocation8 + $0x68] sm:$0xff]  ;;  %v2020_v33 = vmul.f32 0.60653067, %v5044_v30  ;;  %v2224_v30 = vld [vmem:[#allocation8 + $0x38] sm:$0xff] }
 0x5b6   :  { %3605 = vmatprep.subr.mxu1 %v5341_v60 }
 0x5b7   :  { %v1740_v27 = vadd.f32 %v1739_v15, %v1738_v34  ;;  %3606 = vmatpush3.msra.mxu1 %v4691_v19  ;;  %v2223_v34 = vld [vmem:[#allocation8 + $0x30] sm:$0xff]  ;;  %v2222_v15 = vld [vmem:[#allocation8 + $0x28] sm:$0xff] }
 0x5b8   :  { %3645 = vmatprep.subr.mxu1 %v5341_v60 }
 0x5b9   :  { %vm1741_vm11 = vcmp.gt.f32.partialorder %v1740_v27, 1.0 }
 0x5ba   :  { %v1742_v35 = vsel %vm1741_vm11, 1.0, %v5341_v60  ;;  %3608 = vmatmul.mubr.msk.f32.vlgmr.msra.gmra.mxu1 %vm1741_vm11, %v5337_v49 }
 0x5bb   :  { %v1743_v10 = vsub.f32 1.0, %v1742_v35  ;;  %3646 = vmatpush3.msra.mxu1 %v5054_v32  ;;  %3677 = vmatprep.mubr.msk.f32.mxu1 %vm4003_vm0, %v5341_v60  ;;  %v2219_v35 = vld [vmem:[#allocation8 + $0x10] sm:$0xff] }
 0x5bc   :  { %3647 = vmatprep.subr.mxu1 %v5341_v60 }
 0x5bd   :  { %3648 = vmatpush3.msra.mxu1 %v5060_v3  ;;  %v5069_v19 = vmul.f32 %v1743_v10, %v1740_v27  ;;  %v2221_v27 = vld [vmem:[#allocation8 + $0x20] sm:$0xff] }
 0x5be   :  { %3649 = vmatprep.subr.mxu1 %v5341_v60  ;;  %v2217_v10 = vld [vmem:[#allocation8] sm:$0xff] }
 0x5bf   :  { %3650 = vmatpush3.msra.mxu1 %v5066_v58  ;;  %v2022_v40 = vmul.f32 0.9048374, %v5069_v19  ;;  %v2138_v19 = vld [vmem:[#allocation11 + $0x70] sm:$0xff] }
 0x5c0   :  { %3651 = vmatprep.subr.mxu1 %v5341_v60 }
 0x5c1   :  { %3652 = vmatpush3.msra.mxu1 %v5072_v53 }
 0x5c2   :  { %3653 = vmatprep.subr.mxu1 %v5341_v60 }
 0x5c3   :  { %3654 = vmatpush3.msra.mxu1 %v5076_v4 }
 0x5c4   :  { %3655 = vmatprep.subr.mxu1 %v5341_v60 }
 0x5c5   :  { %3656 = vmatpush3.msra.mxu1 %v5080_v6 }
 0x5c6   :  { %3657 = vmatprep.subr.mxu1 %v5341_v60 }
 0x5c7   :  { %3658 = vmatpush3.msra.mxu1 %v5084_v57 }
 0x5c8   :  { %3659 = vmatprep.subr.mxu1 %v5341_v60 }
 0x5c9   :  { %3660 = vmatpush3.msra.mxu1 %v4719_v41  ;;  %v1642_v41 = vmul.f32 0.60653067, %v4997_v63  ;;  %v5165_v63 = vld [vmem:[#allocation9 + $0x30] sm:$0xff] }
 0x5ca   :  { %3661 = vmatprep.subr.mxu1 %v5341_v60 }
 0x5cb   :  { %3662 = vmatpush3.msra.mxu1 %v4723_v42 }
 0x5cc   :  { %3663 = vmatprep.subr.mxu1 %v5341_v60 }
 0x5cd   :  { %3664 = vmatpush3.msra.mxu1 %v4727_v43 }
 0x5ce   :  { %3665 = vmatprep.subr.mxu1 %v5341_v60 }
 0x5cf   :  { %3666 = vmatpush3.msra.mxu1 %v4731_v44 }
 0x5d0   :  { %3667 = vmatprep.subr.mxu1 %v5341_v60 }
 0x5d1   :  { %3668 = vmatpush3.msra.mxu1 %v4735_v45  ;;  %v1644_v45 = vmul.f32 0.9048374, %v5001_v18  ;;  %v5346_v18 = vld [vmem:[#allocation21_spill] sm:$0xff] }
 0x5d2   :  { %3669 = vmatprep.subr.mxu1 %v5341_v60  ;;  %v220_v22 = vadd.f32 %v4901_v5, %v5346_v18 }
 0x5d3   :  { %3670 = vmatpush3.msra.mxu1 %v4739_v46 }
 0x5d4   :  { %3671 = vmatprep.subr.mxu1 %v5341_v60 }
 0x5d5   :  { %3672 = vmatpush3.msra.mxu1 %v4743_v48 }
 0x5d6   :  { %3673 = vmatprep.subr.mxu1 %v5341_v60 }
 0x5d7   :  { %3674 = vmatpush3.msra.mxu1 %v4747_v51  ;;  %v1831_v51 = vmul.f32 0.60653067, %v5005_v26  ;;  %v5183_v26 = vld [vmem:[#allocation9 + $0x10] sm:$0xff] }
 0x5d8   :  { %3675 = vmatprep.subr.mxu1 %v5341_v60 }
 0x5d9   :  { %3676 = vmatpush3.msra.mxu1 %v4751_v55 }
 0x5da   :  { %3678 = vmatmul.mubr.msk.f32.vlgmr.msra.gmra.mxu1 %vm1741_vm11, %v5337_v49  ;;  %3715 = vmatprep.subr.mxu1 %v5341_v60 }
 0x5db   :  { %3747 = vmatprep.mubr.msk.f32.mxu1 %vm4003_vm0, %v5341_v60 }
 0x658   :  { %v1638_v42 = vpop.f32.mrf.mxu1 }
 0x659   :  { %v5113_v43 = vadd.f32 %v1642_v41, %v1638_v42  ;;  %v2133_v41 = vld [vmem:[#allocation11 + $0x48] sm:$0xff]  ;;  %v2132_v42 = vld [vmem:[#allocation11 + $0x40] sm:$0xff] }
 0x65a   :  { %v3539_v44 = vpop.f32.mrf.mxu1 }
 0x65b   :  { %v1645_v46 = vmul.f32 0.09516257, %v5113_v43  ;;  %v2131_v44 = vld [vmem:[#allocation11 + $0x38] sm:$0xff] }
 0x65d   :  { %v5117_v48 = vadd.f32 %v1645_v46, %v1644_v45  ;;  %v2130_v45 = vld [vmem:[#allocation11 + $0x30] sm:$0xff]  ;;  %v2129_v46 = vld [vmem:[#allocation11 + $0x28] sm:$0xff] }
 0x65f   :  { %1647 = vst [vmem:[#allocation12 + $0x20] sm:$0xff] %v5117_v48 }
 0x67a   :  { %v1827_v55 = vpop.f32.mrf.mxu1 }
 0x67b   :  { %v5121_v36 = vadd.f32 %v1831_v51, %v1827_v55  ;;  %v2128_v51 = vld [vmem:[#allocation11 + $0x20] sm:$0xff]  ;;  %v2127_v55 = vld [vmem:[#allocation11 + $0x18] sm:$0xff] }
 0x67c   :  { %v3609_v0 = vpop.f32.mrf.mxu1 }
 0x67d   :  { %v1834_v37 = vmul.f32 0.09516257, %v5121_v36  ;;  %v2126_v0 = vld [vmem:[#allocation11 + $0x10] sm:$0xff] }
 0x67f   :  { %v1835_v20 = vadd.f32 %v1834_v37, %v1833_v62  ;;  %v2125_v62 = vld [vmem:[#allocation11 + $0x8] sm:$0xff]  ;;  %v2124_v37 = vld [vmem:[#allocation11] sm:$0xff] }
 0x681   :  { %vm1836_vm12 = vcmp.gt.f32.partialorder %v1835_v20, 1.0 }
 0x682   :  { %v1837_v14 = vsel %vm1836_vm12, 1.0, %v5341_v60  ;;  %3643 = vmatmul.mubr.msk.f32.vlgmr.msra.gmra.mxu0 %vm1836_vm12, %v5337_v49 }
 0x683   :  { %v1838_v61 = vsub.f32 1.0, %v1837_v14  ;;  %3681 = vmatpush3.msra.mxu0 %v5125_v12  ;;  %3712 = vmatprep.mubr.msk.f32.mxu0 %vm4003_vm0, %v5341_v60 }
 0x684   :  { %3682 = vmatprep.subr.mxu0 %v5341_v60 }
 0x685   :  { %3683 = vmatpush3.msra.mxu0 %v5129_v28  ;;  %v5138_v21 = vmul.f32 %v1838_v61, %v1835_v20  ;;  %v1926_v20 = vmul.f32 0.60653067, %v5113_v43 }
 0x686   :  { %3684 = vmatprep.subr.mxu0 %v5341_v60 }
 0x687   :  { %3685 = vmatpush3.msra.mxu0 %v5135_v59 }
 0x688   :  { %3686 = vmatprep.subr.mxu0 %v5341_v60 }
 0x689   :  { %3687 = vmatpush3.msra.mxu0 %v5141_v8 }
 0x68a   :  { %3688 = vmatprep.subr.mxu0 %v5341_v60 }
 0x68b   :  { %3689 = vmatpush3.msra.mxu0 %v5145_v39 }
 0x68c   :  { %3690 = vmatprep.subr.mxu0 %v5341_v60 }
 0x68d   :  { %3691 = vmatpush3.msra.mxu0 %v5149_v47 }
 0x68e   :  { %3692 = vmatprep.subr.mxu0 %v5341_v60 }
 0x68f   :  { %3693 = vmatpush3.msra.mxu0 %v5153_v50 }
 0x690   :  { %3694 = vmatprep.subr.mxu0 %v5341_v60 }
 0x691   :  { %3695 = vmatpush3.msra.mxu0 %v5157_v54 }
 0x692   :  { %3696 = vmatprep.subr.mxu0 %v5341_v60 }
 0x693   :  { %3697 = vmatpush3.msra.mxu0 %v5161_v56 }
 0x694   :  { %3698 = vmatprep.subr.mxu0 %v5341_v60 }
 0x695   :  { %3699 = vmatpush3.msra.mxu0 %v5165_v63 }
 0x696   :  { %3700 = vmatprep.subr.mxu0 %v5341_v60 }
 0x697   :  { %3701 = vmatpush3.msra.mxu0 %v5169_v1 }
 0x698   :  { %3702 = vmatprep.subr.mxu0 %v5341_v60 }
 0x699   :  { %3703 = vmatpush3.msra.mxu0 %v5173_v2 }
 0x69a   :  { %v2015_v24 = vpop.f32.mrf.mxu1  ;;  %3704 = vmatprep.subr.mxu0 %v5341_v60 }
 0x69b   :  { %v2019_v31 = vadd.f32 %v2015_v24, %v220_v22  ;;  %3705 = vmatpush3.msra.mxu0 %v5177_v16  ;;  %v1928_v22 = vmul.f32 0.9048374, %v5117_v48 }
 0x69c   :  { %v3679_v7 = vpop.f32.mrf.mxu1  ;;  %3706 = vmatprep.subr.mxu0 %v5341_v60 }
 0x69d   :  { %v5190_v11 = vadd.f32 %v2020_v33, %v2019_v31  ;;  %3707 = vmatpush3.msra.mxu0 %v5183_v26  ;;  %v2115_v33 = vmul.f32 0.60653067, %v5121_v36  ;;  %v5347_v36 = vld [vmem:[#allocation20_spill] sm:$0xff] }
 0x69e   :  { %3708 = vmatprep.subr.mxu0 %v5341_v60 }
 0x69f   :  { %v2023_v38 = vmul.f32 0.09516257, %v5190_v11  ;;  %3709 = vmatpush3.msra.mxu0 %v5188_v9 }
 0x6a0   :  { %3710 = vmatprep.subr.mxu0 %v5341_v60 }
 0x6a1   :  { %v2024_v52 = vadd.f32 %v2023_v38, %v2022_v40  ;;  %3711 = vmatpush3.msra.mxu0 %v5194_v13 }
 0x6a2   :  { %3750 = vmatprep.subr.mxu0 %v5341_v60 }
 0x6a3   :  { %vm2025_vm13 = vcmp.gt.f32.partialorder %v2024_v52, 1.0 }
 0x6a4   :  { %v2026_v17 = vsel %vm2025_vm13, 1.0, %v5341_v60  ;;  %3713 = vmatmul.mubr.msk.f32.vlgmr.msra.gmra.mxu0 %vm2025_vm13, %v5337_v49 }
 0x6a5   :  { %v2027_v23 = vsub.f32 1.0, %v2026_v17  ;;  %3751 = vmatpush3.msra.mxu0 %v5054_v32  ;;  %3782 = vmatprep.mubr.msk.f32.mxu0 %vm4003_vm0, %v5341_v60  ;;  %v2220_v32 = vld [vmem:[#allocation8 + $0x18] sm:$0xff] }
 0x6a6   :  { %3752 = vmatprep.subr.mxu0 %v5341_v60 }
 0x6a7   :  { %3753 = vmatpush3.msra.mxu0 %v5060_v3  ;;  %v5211_v25 = vmul.f32 %v2027_v23, %v2024_v52  ;;  %v2218_v3 = vld [vmem:[#allocation8 + $0x8] sm:$0xff]  ;;  %v2117_v52 = vmul.f32 0.9048374, %v5138_v21  ;;  %v2304_v21 = vmul.f32 0.60653067, %v5190_v11 }
 0x6a8   :  { %3754 = vmatprep.subr.mxu0 %v5341_v60 }
 0x6a9   :  { %3755 = vmatpush3.msra.mxu0 %v5066_v58  ;;  %v2139_v58 = vld [vmem:[#allocation11 + $0x78] sm:$0xff] }
 0x6aa   :  { %3756 = vmatprep.subr.mxu0 %v5341_v60  ;;  %3716 = vmatpush3.msra.mxu1 %v2139_v58 }
 0x6ab   :  { %3757 = vmatpush3.msra.mxu0 %v5072_v53  ;;  %3717 = vmatprep.subr.mxu1 %v5341_v60  ;;  %v2137_v53 = vld [vmem:[#allocation11 + $0x68] sm:$0xff] }
 0x6ac   :  { %3758 = vmatprep.subr.mxu0 %v5341_v60  ;;  %3718 = vmatpush3.msra.mxu1 %v2138_v19 }
 0x6ad   :  { %3759 = vmatpush3.msra.mxu0 %v5076_v4  ;;  %3719 = vmatprep.subr.mxu1 %v5341_v60  ;;  %v2136_v4 = vld [vmem:[#allocation11 + $0x60] sm:$0xff] }
 0x6ae   :  { %3760 = vmatprep.subr.mxu0 %v5341_v60  ;;  %3720 = vmatpush3.msra.mxu1 %v2137_v53 }
 0x6af   :  { %3761 = vmatpush3.msra.mxu0 %v5080_v6  ;;  %3721 = vmatprep.subr.mxu1 %v5341_v60  ;;  %v2135_v6 = vld [vmem:[#allocation11 + $0x58] sm:$0xff] }
 0x6b0   :  { %3762 = vmatprep.subr.mxu0 %v5341_v60  ;;  %3722 = vmatpush3.msra.mxu1 %v2136_v4 }
 0x6b1   :  { %3763 = vmatpush3.msra.mxu0 %v5084_v57  ;;  %3723 = vmatprep.subr.mxu1 %v5341_v60  ;;  %v2134_v57 = vld [vmem:[#allocation11 + $0x50] sm:$0xff] }
 0x6b2   :  { %3764 = vmatprep.subr.mxu0 %v5341_v60  ;;  %3724 = vmatpush3.msra.mxu1 %v2135_v6 }
 0x6b3   :  { %3765 = vmatpush3.msra.mxu0 %v2225_v29  ;;  %3725 = vmatprep.subr.mxu1 %v5341_v60 }
 0x6b4   :  { %3766 = vmatprep.subr.mxu0 %v5341_v60  ;;  %3726 = vmatpush3.msra.mxu1 %v2134_v57 }
 0x6b5   :  { %3767 = vmatpush3.msra.mxu0 %v2224_v30  ;;  %3727 = vmatprep.subr.mxu1 %v5341_v60 }
 0x6b6   :  { %3768 = vmatprep.subr.mxu0 %v5341_v60  ;;  %3728 = vmatpush3.msra.mxu1 %v2133_v41 }
 0x6b7   :  { %3769 = vmatpush3.msra.mxu0 %v2223_v34  ;;  %3729 = vmatprep.subr.mxu1 %v5341_v60 }
 0x6b8   :  { %3770 = vmatprep.subr.mxu0 %v5341_v60  ;;  %3730 = vmatpush3.msra.mxu1 %v2132_v42 }
 0x6b9   :  { %3771 = vmatpush3.msra.mxu0 %v2222_v15  ;;  %3731 = vmatprep.subr.mxu1 %v5341_v60 }
 0x6ba   :  { %3772 = vmatprep.subr.mxu0 %v5341_v60  ;;  %3732 = vmatpush3.msra.mxu1 %v2131_v44 }
 0x6bb   :  { %3773 = vmatpush3.msra.mxu0 %v2221_v27  ;;  %3733 = vmatprep.subr.mxu1 %v5341_v60 }
 0x6bc   :  { %3774 = vmatprep.subr.mxu0 %v5341_v60  ;;  %3734 = vmatpush3.msra.mxu1 %v2130_v45 }
 0x6bd   :  { %3775 = vmatpush3.msra.mxu0 %v2220_v32  ;;  %3735 = vmatprep.subr.mxu1 %v5341_v60 }
 0x6be   :  { %3776 = vmatprep.subr.mxu0 %v5341_v60  ;;  %3736 = vmatpush3.msra.mxu1 %v2129_v46 }
 0x6bf   :  { %3777 = vmatpush3.msra.mxu0 %v2219_v35  ;;  %3737 = vmatprep.subr.mxu1 %v5341_v60 }
 0x6c0   :  { %3778 = vmatprep.subr.mxu0 %v5341_v60  ;;  %3738 = vmatpush3.msra.mxu1 %v2128_v51 }
 0x6c1   :  { %3779 = vmatpush3.msra.mxu0 %v2218_v3  ;;  %3739 = vmatprep.subr.mxu1 %v5341_v60 }
 0x6c2   :  { %3780 = vmatprep.subr.mxu0 %v5341_v60  ;;  %3740 = vmatpush3.msra.mxu1 %v2127_v55 }
 0x6c3   :  { %3781 = vmatpush3.msra.mxu0 %v2217_v10  ;;  %3741 = vmatprep.subr.mxu1 %v5341_v60 }
 0x6c4   :  { %3783 = vmatmul.mubr.msk.f32.vlgmr.msra.gmra.mxu0 %vm2025_vm13, %v5337_v49  ;;  %3820 = vmatprep.subr.mxu0 %v5341_v60 }
 0x6c5   :  { %3852 = vmatprep.mubr.msk.f32.mxu0 %vm4003_vm0, %v5341_v60  ;;  %3821 = vmatpush3.msra.mxu0 %v2139_v58 }
 0x6c6   :  { %3822 = vmatprep.subr.mxu0 %v5341_v60  ;;  %3742 = vmatpush3.msra.mxu1 %v2126_v0 }
 0x6c7   :  { %3823 = vmatpush3.msra.mxu0 %v2138_v19  ;;  %3743 = vmatprep.subr.mxu1 %v5341_v60 }
 0x6c8   :  { %3824 = vmatprep.subr.mxu0 %v5341_v60  ;;  %3744 = vmatpush3.msra.mxu1 %v2125_v62 }
 0x6c9   :  { %3825 = vmatpush3.msra.mxu0 %v2137_v53  ;;  %3745 = vmatprep.subr.mxu1 %v5341_v60 }
 0x6ca   :  { %3826 = vmatprep.subr.mxu0 %v5341_v60  ;;  %3746 = vmatpush3.msra.mxu1 %v2124_v37 }
 0x6cb   :  { %3827 = vmatpush3.msra.mxu0 %v2136_v4  ;;  %3785 = vmatprep.subr.mxu1 %v5341_v60 }
 0x6cc   :  { %3828 = vmatprep.subr.mxu0 %v5341_v60 }
 0x6cd   :  { %3829 = vmatpush3.msra.mxu0 %v2135_v6 }
 0x6ce   :  { %3830 = vmatprep.subr.mxu0 %v5341_v60 }
 0x6cf   :  { %3831 = vmatpush3.msra.mxu0 %v2134_v57 }
 0x6d0   :  { %3832 = vmatprep.subr.mxu0 %v5341_v60 }
 0x6d1   :  { %3833 = vmatpush3.msra.mxu0 %v2133_v41 }
 0x6d2   :  { %3834 = vmatprep.subr.mxu0 %v5341_v60 }
 0x6d3   :  { %3835 = vmatpush3.msra.mxu0 %v2132_v42 }
 0x6d4   :  { %3836 = vmatprep.subr.mxu0 %v5341_v60 }
 0x6d5   :  { %3837 = vmatpush3.msra.mxu0 %v2131_v44 }
 0x6d6   :  { %3838 = vmatprep.subr.mxu0 %v5341_v60 }
 0x6d7   :  { %3839 = vmatpush3.msra.mxu0 %v2130_v45 }
 0x6d8   :  { %3840 = vmatprep.subr.mxu0 %v5341_v60 }
 0x6d9   :  { %3841 = vmatpush3.msra.mxu0 %v2129_v46 }
 0x6da   :  { %3842 = vmatprep.subr.mxu0 %v5341_v60 }
 0x6db   :  { %3843 = vmatpush3.msra.mxu0 %v2128_v51 }
 0x6dc   :  { %3844 = vmatprep.subr.mxu0 %v5341_v60 }
 0x6dd   :  { %3845 = vmatpush3.msra.mxu0 %v2127_v55 }
 0x6de   :  { %3846 = vmatprep.subr.mxu0 %v5341_v60 }
 0x6df   :  { %3847 = vmatpush3.msra.mxu0 %v2126_v0 }
 0x6e0   :  { %3848 = vmatprep.subr.mxu0 %v5341_v60 }
 0x6e1   :  { %3849 = vmatpush3.msra.mxu0 %v2125_v62 }
 0x6e2   :  { %3850 = vmatprep.subr.mxu0 %v5341_v60 }
 0x6e3   :  { %3851 = vmatpush3.msra.mxu0 %v2124_v37 }
 0x742   :  { %v1922_v14 = vpop.f32.mrf.mxu0 }
 0x743   :  { %v1927_v61 = vadd.f32 %v1926_v20, %v1922_v14 }
 0x744   :  { %v3644_v18 = vpop.f32.mrf.mxu0 }
 0x745   :  { %v1929_v24 = vmul.f32 0.09516257, %v1927_v61 }
 0x747   :  { %v1930_v31 = vadd.f32 %v1929_v24, %v1928_v22 }
 0x749   :  { %1931 = vst [vmem:[#allocation12 + $0x28] sm:$0xff] %v1930_v31 }
 0x764   :  { %v2111_v7 = vpop.f32.mrf.mxu0 }
 0x765   :  { %v2116_v40 = vadd.f32 %v2115_v33, %v2111_v7 }
 0x766   :  { %v3714_v38 = vpop.f32.mrf.mxu0 }
 0x767   :  { %v2118_v17 = vmul.f32 0.09516257, %v2116_v40  ;;  %v2397_v11 = vmul.f32 0.60653067, %v2116_v40 }
 0x769   :  { %v2119_v23 = vadd.f32 %v2118_v17, %v2117_v52 }
 0x76b   :  { %vm2120_vm14 = vcmp.gt.f32.partialorder %v2119_v23, 1.0 }
 0x76c   :  { %v2121_v43 = vsel %vm2120_vm14, 1.0, %v5341_v60  ;;  %3748 = vmatmul.mubr.msk.f32.vlgmr.msra.gmra.mxu1 %vm2120_vm14, %v5337_v49 }
 0x76d   :  { %v2122_v29 = vsub.f32 1.0, %v2121_v43  ;;  %3786 = vmatpush3.msra.mxu1 %v5125_v12  ;;  %3817 = vmatprep.mubr.msk.f32.mxu1 %vm4003_vm0, %v5341_v60  ;;  %v225_v12 = vadd.f32 %v4901_v5, %v5347_v36  ;;  %v2306_v5 = vmul.f32 0.9048374, %v5211_v25 }
 0x76e   :  { %3787 = vmatprep.subr.mxu1 %v5341_v60 }
 0x76f   :  { %3788 = vmatpush3.msra.mxu1 %v5129_v28  ;;  %v2123_v48 = vmul.f32 %v2122_v29, %v2119_v23 }
 0x770   :  { %3789 = vmatprep.subr.mxu1 %v5341_v60 }
 0x771   :  { %3790 = vmatpush3.msra.mxu1 %v5135_v59  ;;  %v2399_v34 = vmul.f32 0.9048374, %v2123_v48 }
 0x772   :  { %3791 = vmatprep.subr.mxu1 %v5341_v60 }
 0x773   :  { %3792 = vmatpush3.msra.mxu1 %v5141_v8 }
 0x774   :  { %3793 = vmatprep.subr.mxu1 %v5341_v60 }
 0x775   :  { %3794 = vmatpush3.msra.mxu1 %v5145_v39 }
 0x776   :  { %3795 = vmatprep.subr.mxu1 %v5341_v60 }
 0x777   :  { %3796 = vmatpush3.msra.mxu1 %v5149_v47 }
 0x778   :  { %3797 = vmatprep.subr.mxu1 %v5341_v60 }
 0x779   :  { %3798 = vmatpush3.msra.mxu1 %v5153_v50 }
 0x77a   :  { %3799 = vmatprep.subr.mxu1 %v5341_v60 }
 0x77b   :  { %3800 = vmatpush3.msra.mxu1 %v5157_v54  ;;  %v2210_v54 = vmul.f32 0.60653067, %v1927_v61 }
 0x77c   :  { %3801 = vmatprep.subr.mxu1 %v5341_v60 }
 0x77d   :  { %3802 = vmatpush3.msra.mxu1 %v5161_v56 }
 0x77e   :  { %3803 = vmatprep.subr.mxu1 %v5341_v60 }
 0x77f   :  { %3804 = vmatpush3.msra.mxu1 %v5165_v63 }
 0x780   :  { %3805 = vmatprep.subr.mxu1 %v5341_v60 }
 0x781   :  { %3806 = vmatpush3.msra.mxu1 %v5169_v1 }
 0x782   :  { %3807 = vmatprep.subr.mxu1 %v5341_v60 }
 0x783   :  { %3808 = vmatpush3.msra.mxu1 %v5173_v2  ;;  %v2212_v2 = vmul.f32 0.9048374, %v1930_v31 }
 0x784   :  { %v2299_v28 = vpop.f32.mrf.mxu0  ;;  %3809 = vmatprep.subr.mxu1 %v5341_v60 }
 0x785   :  { %v2303_v59 = vadd.f32 %v2299_v28, %v225_v12  ;;  %3810 = vmatpush3.msra.mxu1 %v5177_v16 }
 0x786   :  { %v3784_v8 = vpop.f32.mrf.mxu0  ;;  %3811 = vmatprep.subr.mxu1 %v5341_v60 }
 0x787   :  { %v2305_v39 = vadd.f32 %v2304_v21, %v2303_v59  ;;  %3812 = vmatpush3.msra.mxu1 %v5183_v26 }
 0x788   :  { %3813 = vmatprep.subr.mxu1 %v5341_v60 }
 0x789   :  { %v2307_v47 = vmul.f32 0.09516257, %v2305_v39  ;;  %3814 = vmatpush3.msra.mxu1 %v5188_v9 }
 0x78a   :  { %3815 = vmatprep.subr.mxu1 %v5341_v60 }
 0x78b   :  { %v2308_v50 = vadd.f32 %v2307_v47, %v2306_v5  ;;  %3816 = vmatpush3.msra.mxu1 %v5194_v13 }
 0x78d   :  { %vm2309_vm15 = vcmp.gt.f32.partialorder %v2308_v50, 1.0 }
 0x78e   :  { %3818 = vmatmul.mubr.msk.f32.vlgmr.msra.gmra.mxu1 %vm2309_vm15, %v5337_v49 }
 0x82c   :  { %v2206_v56 = vpop.f32.mrf.mxu1 }
 0x82d   :  { %v2211_v63 = vadd.f32 %v2210_v54, %v2206_v56 }
 0x82e   :  { %v3749_v1 = vpop.f32.mrf.mxu1 }
 0x82f   :  { %v2213_v16 = vmul.f32 0.09516257, %v2211_v63  ;;  %v2490_v13 = vmul.f32 0.60653067, %v2211_v63 }
 0x831   :  { %v2214_v26 = vadd.f32 %v2213_v16, %v2212_v2 }
 0x833   :  { %2215 = vst [vmem:[#allocation12 + $0x30] sm:$0xff] %v2214_v26  ;;  %v2492_v3 = vmul.f32 0.9048374, %v2214_v26 }
 0x84e   :  { %v2393_v25 = vpop.f32.mrf.mxu1 }
 0x84f   :  { %v2398_v30 = vadd.f32 %v2397_v11, %v2393_v25 }
 0x850   :  { %v3819_v9 = vpop.f32.mrf.mxu1 }
 0x851   :  { %v2400_v60 = vmul.f32 0.09516257, %v2398_v30 }
 0x853   :  { %v2401_v15 = vadd.f32 %v2400_v60, %v2399_v34 }
 0x855   :  { %vm2402_vm0 = vcmp.gt.f32.partialorder %v2401_v15, 1.0 }
 0x856   :  { %3853 = vmatmul.mubr.msk.f32.vlgmr.msra.gmra.mxu0 %vm2402_vm0, %v5337_v49 }
 0x916   :  { %v2486_v27 = vpop.f32.mrf.mxu0 }
 0x917   :  { %v2491_v32 = vadd.f32 %v2490_v13, %v2486_v27 }
 0x918   :  { %v3854_v35 = vpop.f32.mrf.mxu0 }
 0x919   :  { %v2493_v10 = vmul.f32 0.09516257, %v2491_v32 }
 0x91b   :  { %v2494_v58 = vadd.f32 %v2493_v10, %v2492_v3 }
 0x91d   :  { %2495 = vst [vmem:[#allocation12 + $0x38] sm:$0xff] %v2494_v58 }
 0x91e   :  { %3978 = shalt.err (!%p3975_p1)
}
 0x91f   :  { %2507 = dma.vmem_to_hbm [thread:$0]  %s2502_s23, 1024, %s5325_s6, [#allocation5], %s3997_s26, %s3997_s26, %s3998_s27  }
 0x920   :  { %3993 = dma.done.wait [#allocation5], 1024  }
 0x921   :  { %3994 = vsyncadd [#allocation5], 4294966272 }
 0x922   :  { %2511 = vsyncpa [#allocation4], 1 }
 0x923   :  { %2512 = vsyncpa [#allocation7], 1 }
 0x924   :  { %2513 = vsyncpa [#allocation10], 1 }
 0x925   :  { %2514 = vsyncpa [#allocation5], 1 }

</bundles_post_ra>
